<compile_context>
chip_gen: v7x
topology: tpu7x:2x2x1
jax: 0.10.0
libtpu: 0.0.40
codegen_flags: <defaults>
</compile_context>

<pallas_src>
import math

import jax
import jax.numpy as jnp
from jax.experimental import pallas as pl
from jax.experimental.pallas import tpu as pltpu

D_MODEL = 32          # small demo size, divisible by n_head (module default is 512)
N_HEAD = 4
HEAD_DIM = D_MODEL // N_HEAD
D_FF = 4 * D_MODEL
EPS = 1e-5            # nn.LayerNorm default
N_VEC_ROWS = 16       # sublane rows reserved for small-vector params in the packed slab

# TODO(synk): dropout layers are identity (inference / p=0); training-mode dropout
# and the unused attn_weight output of nn.MultiheadAttention are not implemented.


def _layernorm(y, gamma, beta):
    mu = jnp.mean(y, axis=-1, keepdims=True)
    var = jnp.mean((y - mu) ** 2, axis=-1, keepdims=True)
    return (y - mu) * jax.lax.rsqrt(var + EPS) * gamma + beta


def cross_fused_kernel(x_ref, wbig_ref, w2_ref, out_ref):
    """Both CrossTransformer.cross() passes, all batches, in one grid step.

    x_ref   : (L, 2*N*D) lane-packed [x1_b0 | .. | x1_b{N-1} | x2_b0 | ..]
    wbig_ref: (2D + 16, 4D) = [wq*scale | wk | wv | wo ; w1 ; small-vector rows]
    w2_ref  : (4D, D)
    out_ref : (L, 2*N*D) packed   [o1_b0 | .. | o1_b{N-1} | o2_b0 | ..]
    """
    L = x_ref.shape[0]
    D = D_MODEL
    N = x_ref.shape[1] // (2 * D)
    H, HD = N_HEAD, HEAD_DIM
    NL = N * L

    # ---- unpack parameters from the two packed refs -------------------------
    wbig = wbig_ref[...]
    wqkvo = wbig[0:D, :]                         # (D, 4D) = [wq*scale | wk | wv | wo]
    w1 = wbig[D:2 * D, :]                        # (D, 4D)
    V = wbig[2 * D:2 * D + N_VEC_ROWS, :]        # (16, 4D) small-vector slab
    bq = V[0:1, :D]                              # already scaled by 1/sqrt(HD)
    bkv = V[1:2, :2 * D]
    bo = V[2:3, :D]
    bf1 = V[3:4, :]                              # (1, 4D)
    bf2, g1, be1 = V[4:5, :D], V[5:6, :D], V[6:7, :D]
    g2, be2 = V[7:8, :D], V[8:9, :D]
    wo = wqkvo[:, 3 * D:]                        # (D, D)
    w2 = w2_ref[...]                             # (4D, D)

    # ---- regroup the lane-packed input to (src, batch, L) rows --------------
    x = x_ref[...]                                                         # (L, 2N*D)
    xr = jnp.transpose(x.reshape(L, 2 * N, D), (1, 0, 2)).reshape(2 * NL, D)

    # ---- fused q/k/v projection for ALL rows; kv(dif) via linearity ---------
    proj = jnp.dot(xr, wqkvo, preferred_element_type=jnp.float32)          # (2NL, 4D)
    q = proj[:, :D] + bq                                                   # (2NL, D)
    kv = proj[NL:, D:3 * D] - proj[:NL, D:3 * D] + bkv                     # (NL, 2D)
    k, v = kv[:, :D], kv[:, D:]

    # ---- batched multi-head attention (batch dim = src*batch*head) ----------
    qh = jnp.transpose(q.reshape(2 * N, L, H, HD), (0, 2, 1, 3)).reshape(2 * N * H, L, HD)
    kh = jnp.transpose(k.reshape(N, L, H, HD), (0, 2, 1, 3)).reshape(N * H, L, HD)
    vh = jnp.transpose(v.reshape(N, L, H, HD), (0, 2, 1, 3)).reshape(N * H, L, HD)
    kh = jnp.concatenate([kh, kh], axis=0)       # k/v shared by both query sources
    vh = jnp.concatenate([vh, vh], axis=0)

    s = jnp.einsum('bqd,bkd->bqk', qh, kh,
                   preferred_element_type=jnp.float32)                     # (2NH, L, L)
    s = s - jnp.max(s, axis=-1, keepdims=True)
    p = jnp.exp(s)
    p = p / jnp.sum(p, axis=-1, keepdims=True)   # exact division (only L keys)
    oh = jnp.einsum('bqk,bkd->bqd', p, vh,
                    preferred_element_type=jnp.float32)                    # (2NH, L, HD)

    attn = jnp.transpose(oh.reshape(2 * N, H, L, HD), (0, 2, 1, 3)).reshape(2 * NL, D)

    # ---- out-proj + residual + LN1, FFN + residual + LN2 --------------------
    y = _layernorm(xr + jnp.dot(attn, wo, preferred_element_type=jnp.float32) + bo,
                   g1, be1)
    hid = jnp.maximum(jnp.dot(y, w1, preferred_element_type=jnp.float32) + bf1, 0.0)
    ff = jnp.dot(hid, w2, preferred_element_type=jnp.float32) + bf2
    o = _layernorm(y + ff, g2, be2)                                        # (2NL, D)

    # ---- single lane-dense (L, 2*N*D) unmasked store -------------------------
    out_ref[...] = jnp.transpose(o.reshape(2 * N, L, D), (1, 0, 2)).reshape(L, 2 * N * D)


def cross_transformer_forward(input1, input2, kernel_params):
    """Mirror of CrossTransformer.forward: returns (output_1, output_2)."""
    L, N, D = input1.shape
    assert D == D_MODEL
    wbig, w2 = kernel_params

    # One lane-dense (L, 2*N*D) input slab (single cheap XLA concat, one DMA).
    x_packed = jnp.concatenate([input1.reshape(L, N * D), input2.reshape(L, N * D)],
                               axis=-1)

    out_packed = pl.pallas_call(
        cross_fused_kernel,
        out_shape=jax.ShapeDtypeStruct((L, 2 * N * D), jnp.float32),
        grid=(1,),
        in_specs=[pl.BlockSpec((L, 2 * N * D), lambda i: (0, 0)),
                  pl.BlockSpec(wbig.shape, lambda i: (0, 0)),
                  pl.BlockSpec(w2.shape, lambda i: (0, 0))],
        out_specs=pl.BlockSpec((L, 2 * N * D), lambda i: (0, 0)),
        compiler_params=pltpu.CompilerParams(
            dimension_semantics=("arbitrary",)),
    )(x_packed, wbig, w2)

    o4 = out_packed.reshape(L, 2, N, D)
    return o4[:, 0], o4[:, 1]


# ----------------------------- parameter handling ---------------------------
def make_raw_params(key):
    """Deterministic synthetic parameters with the same shapes as the module
    (weights pre-transposed to (in, out) orientation)."""
    ks = jax.random.split(key, 8)
    lim = math.sqrt(6.0 / (3 * D_MODEL + D_MODEL))            # xavier_uniform_
    in_proj_w = jax.random.uniform(ks[0], (3 * D_MODEL, D_MODEL), jnp.float32, -lim, lim)
    in_proj_b = 0.01 * jax.random.normal(ks[1], (3 * D_MODEL,), jnp.float32)
    wq = in_proj_w[:D_MODEL].T
    wk = in_proj_w[D_MODEL:2 * D_MODEL].T
    wv = in_proj_w[2 * D_MODEL:].T
    bq = in_proj_b[:D_MODEL]
    bk = in_proj_b[D_MODEL:2 * D_MODEL]
    bv = in_proj_b[2 * D_MODEL:]
    wo = (0.1 * jax.random.normal(ks[2], (D_MODEL, D_MODEL), jnp.float32)).T
    bo = 0.01 * jax.random.normal(ks[3], (D_MODEL,), jnp.float32)
    w1 = (0.1 * jax.random.normal(ks[4], (D_FF, D_MODEL), jnp.float32)).T   # (D, 4D)
    bf1 = 0.01 * jax.random.normal(ks[5], (D_FF,), jnp.float32)
    w2 = (0.1 * jax.random.normal(ks[6], (D_MODEL, D_FF), jnp.float32)).T   # (4D, D)
    bf2 = 0.01 * jax.random.normal(ks[7], (D_MODEL,), jnp.float32)
    g1 = jnp.ones((D_MODEL,), jnp.float32)
    be1 = jnp.zeros((D_MODEL,), jnp.float32)
    g2 = jnp.ones((D_MODEL,), jnp.float32)
    be2 = jnp.zeros((D_MODEL,), jnp.float32)
    return (wq, bq, wk, bk, wv, bv, wo, bo, w1, bf1, w2, bf2, g1, be1, g2, be2)


def pack_params(raw):
    """One-time weight prep: fuse wq|wk|wv|wo, fold the attention scale into
    wq/bq, and pack all small vectors + w1 + the fused weight into a single
    lane-aligned (80, 128) slab (plus w2)."""
    (wq, bq, wk, bk, wv, bv, wo, bo, w1, bf1, w2, bf2, g1, be1, g2, be2) = raw
    D = D_MODEL
    scale = 1.0 / math.sqrt(HEAD_DIM)
    wqkvo = jnp.concatenate([wq * scale, wk, wv, wo], axis=1)               # (D, 4D)

    def row(vec):
        vec = jnp.reshape(vec, (1, -1)).astype(jnp.float32)
        return jnp.pad(vec, ((0, 0), (0, D_FF - vec.shape[1])))

    vec_rows = [row(bq * scale), row(jnp.concatenate([bk, bv])), row(bo), row(bf1),
                row(bf2), row(g1), row(be1), row(g2), row(be2)]
    vecs = jnp.concatenate(
        vec_rows + [jnp.zeros((N_VEC_ROWS - len(vec_rows), D_FF), jnp.float32)], axis=0)
    wbig = jnp.concatenate([wqkvo, w1, vecs], axis=0)                       # (80, 128)
    return wbig, w2


# ----------------------------- pure-JAX reference ---------------------------
def _cross_ref(x_lnd, dif_lnd, raw):
    (wq, bq, wk, bk, wv, bv, wo, bo, w1, bf1, w2, bf2, g1, be1, g2, be2) = raw

    def per_batch(x, dif):                       # (L, D)
        q = x @ wq + bq
        k = dif @ wk + bk
        v = dif @ wv + bv
        scale = 1.0 / math.sqrt(HEAD_DIM)
        outs = []
        for h in range(N_HEAD):
            sl = slice(h * HEAD_DIM, (h + 1) * HEAD_DIM)
            s = (q[:, sl] * scale) @ k[:, sl].T
            p = jax.nn.softmax(s, axis=-1)
            outs.append(p @ v[:, sl])
        attn = jnp.concatenate(outs, axis=-1)
        y = _layernorm(x + attn @ wo + bo, g1, be1)
        ff = jnp.maximum(y @ w1 + bf1, 0.0) @ w2 + bf2
        return _layernorm(y + ff, g2, be2)

    xb = jnp.transpose(x_lnd, (1, 0, 2))
    db = jnp.transpose(dif_lnd, (1, 0, 2))
    return jnp.transpose(jax.vmap(per_batch)(xb, db), (1, 0, 2))


if __name__ == "__main__":
    L, N = 8, 2   # seq_len, batch
    key = jax.random.PRNGKey(0)
    k_in1, k_in2, k_par = jax.random.split(key, 3)
    input1 = jax.random.normal(k_in1, (L, N, D_MODEL), jnp.float32)
    input2 = jax.random.normal(k_in2, (L, N, D_MODEL), jnp.float32)
    raw_params = make_raw_params(k_par)
    kernel_params = pack_params(raw_params)

    out1, out2 = cross_transformer_forward(input1, input2, kernel_params)
    jax.block_until_ready((out1, out2))

    # correctness check against a pure-JAX reference of the same math
    dif = input2 - input1
    ref1 = _cross_ref(input1, dif, raw_params)
    ref2 = _cross_ref(input2, dif, raw_params)
    assert out1.shape == (L, N, D_MODEL) and out2.shape == (L, N, D_MODEL)
    assert jnp.allclose(out1, ref1, atol=1e-3, rtol=1e-3), \
        float(jnp.max(jnp.abs(out1 - ref1)))
    assert jnp.allclose(out2, ref2, atol=1e-3, rtol=1e-3), \
        float(jnp.max(jnp.abs(out2 - ref2)))

    print("KERNEL_OK")
</pallas_src>

<mosaic_0001>
module attributes {stable_mosaic.version = 11 : i64} {
  func.func @cross_fused_kernel(%arg0: i32, %arg1: memref<8x128xf32, #tpu.memory_space<vmem>>, %arg2: memref<80x128xf32, #tpu.memory_space<vmem>>, %arg3: memref<128x32xf32, #tpu.memory_space<vmem>>, %arg4: memref<8x128xf32, #tpu.memory_space<vmem>>) attributes {dimension_semantics = [#tpu.dimension_semantics<arbitrary>], iteration_bounds = array<i64: 1>, scalar_prefetch = 0 : i64, scratch_operands = 0 : i64, tpu.core_type = #tpu.core_type<tc>, window_params = [{pipeline_mode = #tpu.pipeline_mode<synchronous>, transform_indices = @transform_0, window_bounds = array<i64: 8, 128>}, {pipeline_mode = #tpu.pipeline_mode<synchronous>, transform_indices = @transform_1, window_bounds = array<i64: 80, 128>}, {pipeline_mode = #tpu.pipeline_mode<synchronous>, transform_indices = @transform_2, window_bounds = array<i64: 128, 32>}, {pipeline_mode = #tpu.pipeline_mode<synchronous>, transform_indices = @transform_3, window_bounds = array<i64: 8, 128>}]} {
    %c0 = arith.constant 0 : index
    %c0_0 = arith.constant 0 : index
    %0 = vector.load %arg2[%c0, %c0_0] : memref<80x128xf32, #tpu.memory_space<vmem>>, vector<80x128xf32>
    %1 = vector.extract_strided_slice %0 {offsets = [0, 0], sizes = [32, 128], strides = [1, 1]} : vector<80x128xf32> to vector<32x128xf32>
    %2 = vector.extract_strided_slice %0 {offsets = [32, 0], sizes = [32, 128], strides = [1, 1]} : vector<80x128xf32> to vector<32x128xf32>
    %3 = vector.extract_strided_slice %0 {offsets = [64, 0], sizes = [16, 128], strides = [1, 1]} : vector<80x128xf32> to vector<16x128xf32>
    %4 = vector.extract_strided_slice %3 {offsets = [0, 0], sizes = [1, 32], strides = [1, 1]} : vector<16x128xf32> to vector<1x32xf32>
    %5 = vector.extract_strided_slice %3 {offsets = [1, 0], sizes = [1, 64], strides = [1, 1]} : vector<16x128xf32> to vector<1x64xf32>
    %6 = vector.extract_strided_slice %3 {offsets = [2, 0], sizes = [1, 32], strides = [1, 1]} : vector<16x128xf32> to vector<1x32xf32>
    %7 = vector.extract_strided_slice %3 {offsets = [3, 0], sizes = [1, 128], strides = [1, 1]} : vector<16x128xf32> to vector<1x128xf32>
    %8 = vector.extract_strided_slice %3 {offsets = [4, 0], sizes = [1, 32], strides = [1, 1]} : vector<16x128xf32> to vector<1x32xf32>
    %9 = vector.extract_strided_slice %3 {offsets = [5, 0], sizes = [1, 32], strides = [1, 1]} : vector<16x128xf32> to vector<1x32xf32>
    %10 = vector.extract_strided_slice %3 {offsets = [6, 0], sizes = [1, 32], strides = [1, 1]} : vector<16x128xf32> to vector<1x32xf32>
    %11 = vector.extract_strided_slice %3 {offsets = [7, 0], sizes = [1, 32], strides = [1, 1]} : vector<16x128xf32> to vector<1x32xf32>
    %12 = vector.extract_strided_slice %3 {offsets = [8, 0], sizes = [1, 32], strides = [1, 1]} : vector<16x128xf32> to vector<1x32xf32>
    %13 = vector.extract_strided_slice %1 {offsets = [0, 96], sizes = [32, 32], strides = [1, 1]} : vector<32x128xf32> to vector<32x32xf32>
    %c0_1 = arith.constant 0 : index
    %c0_2 = arith.constant 0 : index
    %14 = vector.load %arg3[%c0_1, %c0_2] : memref<128x32xf32, #tpu.memory_space<vmem>>, vector<128x32xf32>
    %c0_3 = arith.constant 0 : index
    %c0_4 = arith.constant 0 : index
    %15 = vector.load %arg1[%c0_3, %c0_4] : memref<8x128xf32, #tpu.memory_space<vmem>>, vector<8x128xf32>
    %16 = vector.shape_cast %15 : vector<8x128xf32> to vector<8x4x32xf32>
    %17 = tpu.transpose %16, [1, 0, 2] : vector<8x4x32xf32> -> vector<4x8x32xf32>
    %18 = vector.shape_cast %17 : vector<4x8x32xf32> to vector<32x32xf32>
    %cst = arith.constant dense<0.000000e+00> : vector<32x128xf32>
    %19 = tpu.matmul %18, %1, %cst {dimension_numbers = #tpu.dot_dimension_numbers<[1], [0], [0], [1], [0, 0, 1, 1], [], []>} : vector<32x32xf32>, vector<32x128xf32>, vector<32x128xf32> -> vector<32x128xf32>
    %20 = vector.extract_strided_slice %19 {offsets = [0, 0], sizes = [32, 32], strides = [1, 1]} : vector<32x128xf32> to vector<32x32xf32>
    %21 = vector.broadcast %4 : vector<1x32xf32> to vector<32x32xf32>
    %22 = arith.addf %20, %21 : vector<32x32xf32>
    %23 = vector.extract_strided_slice %19 {offsets = [16, 32], sizes = [16, 64], strides = [1, 1]} : vector<32x128xf32> to vector<16x64xf32>
    %24 = vector.extract_strided_slice %19 {offsets = [0, 32], sizes = [16, 64], strides = [1, 1]} : vector<32x128xf32> to vector<16x64xf32>
    %25 = arith.subf %23, %24 : vector<16x64xf32>
    %26 = vector.broadcast %5 : vector<1x64xf32> to vector<16x64xf32>
    %27 = arith.addf %25, %26 : vector<16x64xf32>
    %28 = vector.extract_strided_slice %27 {offsets = [0, 0], sizes = [16, 32], strides = [1, 1]} : vector<16x64xf32> to vector<16x32xf32>
    %29 = vector.extract_strided_slice %27 {offsets = [0, 32], sizes = [16, 32], strides = [1, 1]} : vector<16x64xf32> to vector<16x32xf32>
    %30 = vector.shape_cast %22 : vector<32x32xf32> to vector<4x8x4x8xf32>
    %31 = tpu.transpose %30, [0, 2, 1, 3] : vector<4x8x4x8xf32> -> vector<4x4x8x8xf32>
    %32 = vector.shape_cast %31 : vector<4x4x8x8xf32> to vector<16x8x8xf32>
    %33 = vector.shape_cast %28 : vector<16x32xf32> to vector<2x8x4x8xf32>
    %34 = tpu.transpose %33, [0, 2, 1, 3] : vector<2x8x4x8xf32> -> vector<2x4x8x8xf32>
    %35 = vector.shape_cast %34 : vector<2x4x8x8xf32> to vector<8x8x8xf32>
    %36 = vector.shape_cast %29 : vector<16x32xf32> to vector<2x8x4x8xf32>
    %37 = tpu.transpose %36, [0, 2, 1, 3] : vector<2x8x4x8xf32> -> vector<2x4x8x8xf32>
    %38 = vector.shape_cast %37 : vector<2x4x8x8xf32> to vector<8x8x8xf32>
    %39 = tpu.concatenate %35, %35 in 0 : vector<8x8x8xf32>, vector<8x8x8xf32> -> vector<16x8x8xf32>
    %40 = tpu.concatenate %38, %38 in 0 : vector<8x8x8xf32>, vector<8x8x8xf32> -> vector<16x8x8xf32>
    "tpu.trace_start"() <{level = 10 : i32, message = "bqd,bkd->bqk"}> : () -> ()
    %cst_5 = arith.constant dense<0.000000e+00> : vector<16x8x8xf32>
    %41 = tpu.matmul %32, %39, %cst_5 {dimension_numbers = #tpu.dot_dimension_numbers<[2], [2], [1], [1], [0, 0, 0, 1, 1, 1], [0], [0]>} : vector<16x8x8xf32>, vector<16x8x8xf32>, vector<16x8x8xf32> -> vector<16x8x8xf32>
    "tpu.trace_stop"() : () -> ()
    %cst_6 = arith.constant dense<0xFF800000> : vector<16x8xf32>
    %42 = vector.multi_reduction <maximumf>, %41, %cst_6 [2] : vector<16x8x8xf32> to vector<16x8xf32>
    %43 = vector.shape_cast %42 : vector<16x8xf32> to vector<16x8x1xf32>
    %44 = vector.broadcast %43 : vector<16x8x1xf32> to vector<16x8x8xf32>
    %45 = arith.subf %41, %44 : vector<16x8x8xf32>
    %46 = math.exp %45 : vector<16x8x8xf32>
    %cst_7 = arith.constant dense<0.000000e+00> : vector<16x8xf32>
    %47 = vector.multi_reduction <add>, %46, %cst_7 [2] : vector<16x8x8xf32> to vector<16x8xf32>
    %48 = vector.shape_cast %47 : vector<16x8xf32> to vector<16x8x1xf32>
    %49 = vector.broadcast %48 : vector<16x8x1xf32> to vector<16x8x8xf32>
    %50 = arith.divf %46, %49 : vector<16x8x8xf32>
    "tpu.trace_start"() <{level = 10 : i32, message = "bqk,bkd->bqd"}> : () -> ()
    %cst_8 = arith.constant dense<0.000000e+00> : vector<16x8x8xf32>
    %51 = tpu.matmul %50, %40, %cst_8 {dimension_numbers = #tpu.dot_dimension_numbers<[2], [1], [1], [2], [0, 0, 0, 1, 1, 2], [0], [0]>} : vector<16x8x8xf32>, vector<16x8x8xf32>, vector<16x8x8xf32> -> vector<16x8x8xf32>
    "tpu.trace_stop"() : () -> ()
    %52 = vector.shape_cast %51 : vector<16x8x8xf32> to vector<4x4x8x8xf32>
    %53 = tpu.transpose %52, [0, 2, 1, 3] : vector<4x4x8x8xf32> -> vector<4x8x4x8xf32>
    %54 = vector.shape_cast %53 : vector<4x8x4x8xf32> to vector<32x32xf32>
    %cst_9 = arith.constant dense<0.000000e+00> : vector<32x32xf32>
    %55 = tpu.matmul %54, %13, %cst_9 {dimension_numbers = #tpu.dot_dimension_numbers<[1], [0], [0], [1], [0, 0, 1, 1], [], []>} : vector<32x32xf32>, vector<32x32xf32>, vector<32x32xf32> -> vector<32x32xf32>
    %56 = arith.addf %18, %55 : vector<32x32xf32>
    %57 = vector.broadcast %6 : vector<1x32xf32> to vector<32x32xf32>
    %58 = arith.addf %56, %57 : vector<32x32xf32>
    %cst_10 = arith.constant dense<0.000000e+00> : vector<32xf32>
    %59 = vector.multi_reduction <add>, %58, %cst_10 [1] : vector<32x32xf32> to vector<32xf32>
    %60 = vector.shape_cast %59 : vector<32xf32> to vector<32x1xf32>
    %cst_11 = arith.constant 3.200000e+01 : f32
    %61 = vector.broadcast %cst_11 : f32 to vector<32x1xf32>
    %62 = arith.divf %60, %61 : vector<32x1xf32>
    %63 = vector.broadcast %62 : vector<32x1xf32> to vector<32x32xf32>
    %64 = arith.subf %58, %63 : vector<32x32xf32>
    %65 = arith.mulf %64, %64 : vector<32x32xf32>
    %cst_12 = arith.constant dense<0.000000e+00> : vector<32xf32>
    %66 = vector.multi_reduction <add>, %65, %cst_12 [1] : vector<32x32xf32> to vector<32xf32>
    %67 = vector.shape_cast %66 : vector<32xf32> to vector<32x1xf32>
    %cst_13 = arith.constant 3.200000e+01 : f32
    %68 = vector.broadcast %cst_13 : f32 to vector<32x1xf32>
    %69 = arith.divf %67, %68 : vector<32x1xf32>
    %70 = vector.broadcast %62 : vector<32x1xf32> to vector<32x32xf32>
    %71 = arith.subf %58, %70 : vector<32x32xf32>
    %cst_14 = arith.constant 9.99999974E-6 : f32
    %72 = vector.broadcast %cst_14 : f32 to vector<32x1xf32>
    %73 = arith.addf %69, %72 : vector<32x1xf32>
    %74 = math.rsqrt %73 : vector<32x1xf32>
    %75 = vector.broadcast %74 : vector<32x1xf32> to vector<32x32xf32>
    %76 = arith.mulf %71, %75 : vector<32x32xf32>
    %77 = vector.broadcast %9 : vector<1x32xf32> to vector<32x32xf32>
    %78 = arith.mulf %76, %77 : vector<32x32xf32>
    %79 = vector.broadcast %10 : vector<1x32xf32> to vector<32x32xf32>
    %80 = arith.addf %78, %79 : vector<32x32xf32>
    %cst_15 = arith.constant dense<0.000000e+00> : vector<32x128xf32>
    %81 = tpu.matmul %80, %2, %cst_15 {dimension_numbers = #tpu.dot_dimension_numbers<[1], [0], [0], [1], [0, 0, 1, 1], [], []>} : vector<32x32xf32>, vector<32x128xf32>, vector<32x128xf32> -> vector<32x128xf32>
    %82 = vector.broadcast %7 : vector<1x128xf32> to vector<32x128xf32>
    %83 = arith.addf %81, %82 : vector<32x128xf32>
    %cst_16 = arith.constant 0.000000e+00 : f32
    %84 = vector.broadcast %cst_16 : f32 to vector<32x128xf32>
    %85 = arith.maximumf %83, %84 : vector<32x128xf32>
    %cst_17 = arith.constant dense<0.000000e+00> : vector<32x32xf32>
    %86 = tpu.matmul %85, %14, %cst_17 {dimension_numbers = #tpu.dot_dimension_numbers<[1], [0], [0], [1], [0, 0, 1, 1], [], []>} : vector<32x128xf32>, vector<128x32xf32>, vector<32x32xf32> -> vector<32x32xf32>
    %87 = vector.broadcast %8 : vector<1x32xf32> to vector<32x32xf32>
    %88 = arith.addf %86, %87 : vector<32x32xf32>
    %89 = arith.addf %80, %88 : vector<32x32xf32>
    %cst_18 = arith.constant dense<0.000000e+00> : vector<32xf32>
    %90 = vector.multi_reduction <add>, %89, %cst_18 [1] : vector<32x32xf32> to vector<32xf32>
    %91 = vector.shape_cast %90 : vector<32xf32> to vector<32x1xf32>
    %cst_19 = arith.constant 3.200000e+01 : f32
    %92 = vector.broadcast %cst_19 : f32 to vector<32x1xf32>
    %93 = arith.divf %91, %92 : vector<32x1xf32>
    %94 = vector.broadcast %93 : vector<32x1xf32> to vector<32x32xf32>
    %95 = arith.subf %89, %94 : vector<32x32xf32>
    %96 = arith.mulf %95, %95 : vector<32x32xf32>
    %cst_20 = arith.constant dense<0.000000e+00> : vector<32xf32>
    %97 = vector.multi_reduction <add>, %96, %cst_20 [1] : vector<32x32xf32> to vector<32xf32>
    %98 = vector.shape_cast %97 : vector<32xf32> to vector<32x1xf32>
    %cst_21 = arith.constant 3.200000e+01 : f32
    %99 = vector.broadcast %cst_21 : f32 to vector<32x1xf32>
    %100 = arith.divf %98, %99 : vector<32x1xf32>
    %101 = vector.broadcast %93 : vector<32x1xf32> to vector<32x32xf32>
    %102 = arith.subf %89, %101 : vector<32x32xf32>
    %cst_22 = arith.constant 9.99999974E-6 : f32
    %103 = vector.broadcast %cst_22 : f32 to vector<32x1xf32>
    %104 = arith.addf %100, %103 : vector<32x1xf32>
    %105 = math.rsqrt %104 : vector<32x1xf32>
    %106 = vector.broadcast %105 : vector<32x1xf32> to vector<32x32xf32>
    %107 = arith.mulf %102, %106 : vector<32x32xf32>
    %108 = vector.broadcast %11 : vector<1x32xf32> to vector<32x32xf32>
    %109 = arith.mulf %107, %108 : vector<32x32xf32>
    %110 = vector.broadcast %12 : vector<1x32xf32> to vector<32x32xf32>
    %111 = arith.addf %109, %110 : vector<32x32xf32>
    %112 = vector.shape_cast %111 : vector<32x32xf32> to vector<4x8x32xf32>
    %113 = tpu.transpose %112, [1, 0, 2] : vector<4x8x32xf32> -> vector<8x4x32xf32>
    %114 = vector.shape_cast %113 : vector<8x4x32xf32> to vector<8x128xf32>
    %c0_23 = arith.constant 0 : index
    %c0_24 = arith.constant 0 : index
    %115 = vector.load %arg4[%c0_23, %c0_24] : memref<8x128xf32, #tpu.memory_space<vmem>>, vector<8x128xf32>
    tpu.vector_store %arg4[%c0_23, %c0_24], %114 {strides = array<i32>} : memref<8x128xf32, #tpu.memory_space<vmem>>, vector<8x128xf32>,
    return
  }
  func.func @transform_0(%arg0: i32) -> (i32, i32) {
    %c0_i32 = arith.constant 0 : i32
    %c0_i32_0 = arith.constant 0 : i32
    %c0_i32_1 = arith.constant 0 : i32
    return %c0_i32, %c0_i32_0 : i32, i32
  }
  func.func @transform_1(%arg0: i32) -> (i32, i32) {
    %c0_i32 = arith.constant 0 : i32
    %c0_i32_0 = arith.constant 0 : i32
    %c0_i32_1 = arith.constant 0 : i32
    return %c0_i32, %c0_i32_0 : i32, i32
  }
  func.func @transform_2(%arg0: i32) -> (i32, i32) {
    %c0_i32 = arith.constant 0 : i32
    %c0_i32_0 = arith.constant 0 : i32
    %c0_i32_1 = arith.constant 0 : i32
    return %c0_i32, %c0_i32_0 : i32, i32
  }
  func.func @transform_3(%arg0: i32) -> (i32, i32) {
    %c0_i32 = arith.constant 0 : i32
    %c0_i32_0 = arith.constant 0 : i32
    %c0_i32_1 = arith.constant 0 : i32
    return %c0_i32, %c0_i32_0 : i32, i32
  }
}

</mosaic_0001>

<bundles_post_ra>
// kernel: tpu_custom_call.1
= control target key start
LH: loop header
LB: loop body
LE: loop exit
PB: predicated region body
PF: predicated region fallthrough
CT: control target
= control target key end

     0   :  { %s5890_s16 = smov 32   ;;  %s5891_s17 = smov 96   ;;  %s6995_s0 = inlined_call_operand.vmem [shape: f32[8,128], index: 0, kind: input, shape index: {}]   ;;  %s6996_s1 = inlined_call_operand.vmem [shape: f32[80,128], index: 1, kind: input, shape index: {}]   ;;  %s6997_s2 = inlined_call_operand.vmem [shape: f32[128,32], index: 2, kind: input, shape index: {}]   ;;  %s6998_s3 = inlined_call_operand.hbm [shape: f32[8,128], index: 3, kind: output, shape index: {}]  }
   0x1   :  { %v41_v0 = vld [vmem:[%s6995_s0] sm:$0xff]  ;;  %v5937_v2 = vld [vmem:[%s6996_s1 + $0x8] sm:$0xff]  ;;  %v17_v3 = vld [vmem:[%s6996_s1 + $0x10] sm:$0xff] }
   0x2   :  { %v5930_v1 = vld [vmem:[%s6996_s1] sm:$0xff]  ;;  %49 = vrot.lane.b32.xlu1 %v41_v0, %s5890_s16  ;;  %43 = vrot.lane.b32.xlu0 %v41_v0, %s5891_s17  ;;  %v18_v6 = vld [vmem:[%s6996_s1 + $0x18] sm:$0xff] }
   0x3   :  { %v5773_v4 = vpack.i.bf16 %v5937_v2, %v5930_v1  ;;  %v5703_v5 = vpack.c.bf16 %v5937_v2, %v5930_v1 }
   0x4   :  { %8 = vsyncpa [#allocation3], 0  ;;  %v5707_v7 = vpack.c.bf16 %v18_v6, %v17_v3  ;;  %s5892_s23 = smov 64   ;;  %v57_v8 = vlaneseq  ;;  %v23_v10 = vld [vmem:[%s6996_s1 + $0x40] sm:$0xff]  ;;  %v5893_v13 = vmov 1983009808  }
   0x5   :  { %5704 = vmatprep.subr.bf16.mxu0 %v5703_v5  ;;  %v55_v14 = vunpack.c.l.s4 %v5893_v13  ;;  %v5894_v15 = vmov 1934713408   ;;  %vm188_vm0 = vcmask 261120   ;;  %s5895_s26 = smov 112   ;;  %s5896_s27 = smov 120   ;;  %vm5899_vm1 = vmmov 0  }
   0x6   :  { %46 = vrot.lane.b32.xlu0 %v41_v0, %s5892_s23  ;;  %5706 = vmatpush3.bf16.msra.mxu0 %v5703_v5  ;;  %v5950_v9 = vshrl.u32 %v57_v8, 7  ;;  %v87_v16 = vunpack.c.l.s4 %v5894_v15  ;;  %s5897_s28 = smov 104   ;;  %vm1496_vm2 = vcmask 64512   ;;  %s5900_s6 = smov 16   ;;  %vm4629_vm3 = vcmask 130048  }
   0x7   :  { %5708 = vmatprep.subr.bf16.mxu0 %v5707_v7  ;;  %v56_v17 = vunpack.c.0.s8 %v55_v14  ;;  %s5901_s7 = smov 8   ;;  %s5902_s8 = smov 24   ;;  %vm4634_vm4 = vcmask 195584   ;;  %vm5248_vm5 = vcmask 523264   ;;  %vm5250_vm6 = vcmask 785408  }
   0x8   :  { %v298_v11 = vsub.s32 1, %v5950_v9  ;;  %v88_v20 = vunpack.c.0.s8 %v87_v16  ;;  %v288_v60 = vsub.s32 0, %v5950_v9 }
   0x9   :  { %v5958_v21 = vsub.s32 %v56_v17, %v5950_v9 }
   0xa   :  { %5710 = vmatpush3.bf16.msra.mxu0 %v5707_v7  ;;  %v299_v12 = vrot.slane %v23_v10, %v298_v11  ;;  %v5961_v27 = vsub.s32 %v88_v20, %v5950_v9  ;;  %v289_v61 = vrot.slane %v23_v10, %v288_v60 }
   0xc   :  { %301 = vrot.lane.b32.xlu1 %v299_v12, %s5890_s16 }
  0x74   :  { %v50_v18 = vpop.permute.xlu1 %49  ;;  %v44_v19 = vpop.permute.xlu0 %43 }
  0x75   :  { %v68_v22 = vcombine.low %v44_v19, %v50_v18  ;;  %v69_v23 = vcombine.high %v44_v19, %v50_v18 }
  0x77   :  { %v76_v28 = vrot.slane %v68_v22, %v5958_v21  ;;  %v83_v29 = vrot.slane %v69_v23, %v5958_v21  ;;  %v5898_v22 = vmov 0.0  }
  0x78   :  { %v47_v24 = vpop.permute.xlu0 %46  ;;  %5477 = vmatprep.subr.mxu0 %v5898_v22  ;;  %5482 = vmatprep.subr.mxu1 %v5898_v22 }
  0x79   :  { %v52_v25 = vcombine.low %v41_v0, %v47_v24  ;;  %v53_v26 = vcombine.high %v41_v0, %v47_v24  ;;  %5484 = vmatprep.mubr.msk.f32.mxu1 %vm5899_vm1, %v5898_v22 }
  0x7b   :  { %v60_v30 = vrot.slane %v52_v25, %v5958_v21  ;;  %v67_v31 = vrot.slane %v53_v26, %v5958_v21 }
  0x7d   :  { %v84_v32 = vcombine.low %v60_v30, %v76_v28  ;;  %v85_v33 = vcombine.high %v60_v30, %v76_v28  ;;  %v100_v34 = vcombine.low %v67_v31, %v83_v29  ;;  %v101_v35 = vcombine.high %v67_v31, %v83_v29 }
  0x7e   :  { %v302_v8 = vpop.permute.xlu1 %301 }
  0x7f   :  { %v92_v36 = vrot.slane %v84_v32, %v5961_v27  ;;  %v99_v37 = vrot.slane %v85_v33, %v5961_v27  ;;  %v108_v38 = vrot.slane %v100_v34, %v5961_v27  ;;  %v115_v39 = vrot.slane %v101_v35, %v5961_v27 }
  0x81   :  { %v120_v40 = vcombine.low %v92_v36, %v99_v37  ;;  %v5267_v41 = vcombine.high %v92_v36, %v99_v37  ;;  %v136_v42 = vcombine.low %v108_v38, %v115_v39  ;;  %v5268_v43 = vcombine.high %v108_v38, %v115_v39 }
  0x83   :  { %v127_v44 = vrot.slane %v120_v40, %v5958_v21  ;;  %v135_v45 = vrot.slane %v5267_v41, %v5958_v21  ;;  %v143_v46 = vrot.slane %v136_v42, %v5958_v21  ;;  %v151_v47 = vrot.slane %v5268_v43, %v5958_v21 }
  0x85   :  { %v152_v48 = vcombine.low %v127_v44, %v135_v45  ;;  %v153_v49 = vcombine.high %v127_v44, %v135_v45  ;;  %v168_v50 = vcombine.low %v143_v46, %v151_v47  ;;  %v169_v51 = vcombine.high %v143_v46, %v151_v47 }
  0x87   :  { %v160_v52 = vrot.slane %v152_v48, %v5961_v27  ;;  %v176_v53 = vrot.slane %v168_v50, %v5961_v27  ;;  %v167_v54 = vrot.slane %v153_v49, %v5961_v27  ;;  %v183_v55 = vrot.slane %v169_v51, %v5961_v27 }
  0x89   :  { %v5979_v56 = vcombine.low %v160_v52, %v176_v53  ;;  %v5981_v57 = vcombine.high %v160_v52, %v176_v53  ;;  %v5985_v58 = vcombine.low %v167_v54, %v183_v55  ;;  %v5991_v59 = vcombine.high %v167_v54, %v183_v55 }
  0x8b   :  { %5471 = vmatprep.mubr.msk.f32.mxu0 %vm188_vm0, %v5979_v56 }
  0x8c   :  { %5472 = vmatmul.mubr.msk.f32.vlgmr.msra.gmra.mrb[0].mxu0 %vm188_vm0, %v5981_v57 }
  0x8d   :  { %5474 = vmatprep.mubr.msk.f32.mxu0 %vm188_vm0, %v5985_v58 }
  0x90   :  { %5475 = vmatmul.mubr.msk.f32.gmra.mrb[2].mxu0 %vm188_vm0, %v5991_v59 }
  0x91   :  { %5479 = vmatprep.mubr.msk.f32.mxu0 %vm5899_vm1, %v5898_v22 }
 0x15f   :  { %v5473_v62 = vpop.f32.mrb[0].mxu0 }
 0x160   :  { %v5998_v63 = vadd.f32 %v5473_v62, %v289_v61  ;;  %v267_v0 = vpop.f32.mrb[1].mxu0 }
 0x161   :  { %v290_v14 = vadd.f32 %v289_v61, %v267_v0 }
 0x163   :  { %v5476_v3 = vpop.f32.mrb[2].mxu0 }
 0x164   :  { %v6000_v5 = vadd.f32 %v5476_v3, %v289_v61  ;;  %v295_v6 = vsub.f32 %v5476_v3, %v5473_v62  ;;  %v277_v7 = vpop.f32.mrb[3].mxu0 }
 0x165   :  { %v6002_v11 = vadd.f32 %v289_v61, %v277_v7  ;;  %v294_v12 = vsub.f32 %v277_v7, %v267_v0 }
 0x166   :  { %v305_v10 = vadd.f32 %v302_v8, %v295_v6 }
 0x167   :  { %v304_v13 = vadd.f32 %v302_v8, %v294_v12 }
 0x169   :  { %896 = vrot.lane.b32.xlu1 %v304_v13, %s5895_s26  ;;  %892 = vrot.lane.b32.xlu0 %v304_v13, %s5896_s27 }
 0x16d   :  { %894 = vrot.lane.b32.xlu1 %v305_v10, %s5896_s27  ;;  %900 = vrot.lane.b32.xlu0 %v304_v13, %s5897_s28 }
 0x171   :  { %902 = vrot.lane.b32.xlu1 %v305_v10, %s5897_s28  ;;  %898 = vrot.lane.b32.xlu0 %v305_v10, %s5895_s26 }
 0x175   :  { %322 = vrot.lane.b32.xlu1 %v290_v14, %s5895_s26  ;;  %310 = vrot.lane.b32.xlu0 %v290_v14, %s5896_s27 }
 0x179   :  { %906 = vrot.lane.b32.xlu1 %v305_v10, %s5891_s17  ;;  %334 = vrot.lane.b32.xlu0 %v290_v14, %s5897_s28 }
 0x17d   :  { %904 = vrot.lane.b32.xlu0 %v304_v13, %s5891_s17 }
 0x1db   :  { %v897_v15 = vpop.permute.xlu1 %896  ;;  %v893_v16 = vpop.permute.xlu0 %892 }
 0x1dc   :  { %912 = vrot.lane.b32.xlu0 %v897_v15, %s5891_s17  ;;  %908 = vrot.lane.b32.xlu1 %v893_v16, %s5891_s17 }
 0x1df   :  { %v6017_v17 = vpop.permute.xlu1 %894  ;;  %v901_v18 = vpop.permute.xlu0 %900 }
 0x1e0   :  { %910 = vrot.lane.b32.xlu0 %v6017_v17, %s5891_s17  ;;  %916 = vrot.lane.b32.xlu1 %v901_v18, %s5891_s17 }
 0x1e3   :  { %v6022_v19 = vpop.permute.xlu1 %902  ;;  %v6024_v20 = vpop.permute.xlu0 %898 }
 0x1e4   :  { %918 = vrot.lane.b32.xlu0 %v6022_v19, %s5891_s17  ;;  %914 = vrot.lane.b32.xlu1 %v6024_v20, %s5891_s17 }
 0x1e7   :  { %v311_v23 = vpop.permute.xlu0 %310  ;;  %v323_v25 = vpop.permute.xlu1 %322 }
 0x1e8   :  { %324 = vrot.lane.b32.xlu0 %v5998_v63, %s5895_s26  ;;  %312 = vrot.lane.b32.xlu1 %v5998_v63, %s5896_s27  ;;  %v346_v29 = vcombine.low %v290_v14, %v323_v25  ;;  %v347_v30 = vcombine.high %v290_v14, %v323_v25 }
 0x1ea   :  { %v354_v33 = vrot.slane %v346_v29, %v5958_v21  ;;  %v361_v34 = vrot.slane %v347_v30, %v5958_v21 }
 0x1eb   :  { %v335_v24 = vpop.permute.xlu0 %334  ;;  %v907_v47 = vpop.permute.xlu1 %906 }
 0x1ec   :  { %336 = vrot.lane.b32.xlu1 %v5998_v63, %s5897_s28  ;;  %314 = vrot.lane.b32.xlu0 %v6002_v11, %s5896_s27  ;;  %v362_v26 = vcombine.low %v311_v23, %v335_v24  ;;  %v363_v28 = vcombine.high %v311_v23, %v335_v24 }
 0x1ee   :  { %v370_v31 = vrot.slane %v362_v26, %v5958_v21  ;;  %v377_v32 = vrot.slane %v363_v28, %v5958_v21 }
 0x1ef   :  { %v905_v52 = vpop.permute.xlu0 %904 }
 0x1f0   :  { %326 = vrot.lane.b32.xlu1 %v6002_v11, %s5895_s26  ;;  %338 = vrot.lane.b32.xlu0 %v6002_v11, %s5897_s28  ;;  %v378_v35 = vcombine.low %v354_v33, %v370_v31  ;;  %v379_v36 = vcombine.high %v354_v33, %v370_v31  ;;  %v394_v37 = vcombine.low %v361_v34, %v377_v32 }
 0x1f1   :  { %v395_v38 = vcombine.high %v361_v34, %v377_v32 }
 0x1f2   :  { %v386_v39 = vrot.slane %v378_v35, %v5961_v27  ;;  %v393_v40 = vrot.slane %v379_v36, %v5961_v27  ;;  %v402_v41 = vrot.slane %v394_v37, %v5961_v27 }
 0x1f3   :  { %v409_v42 = vrot.slane %v395_v38, %v5961_v27 }
 0x1f4   :  { %316 = vrot.lane.b32.xlu1 %v6000_v5, %s5896_s27  ;;  %328 = vrot.lane.b32.xlu0 %v6000_v5, %s5895_s26  ;;  %v618_v43 = vcombine.low %v386_v39, %v393_v40  ;;  %v5273_v44 = vcombine.high %v386_v39, %v393_v40 }
 0x1f5   :  { %v634_v45 = vcombine.low %v402_v41, %v409_v42  ;;  %v5274_v46 = vcombine.high %v402_v41, %v409_v42 }
 0x1f6   :  { %v625_v48 = vrot.slane %v618_v43, %v5958_v21  ;;  %v633_v49 = vrot.slane %v5273_v44, %v5958_v21 }
 0x1f7   :  { %v641_v50 = vrot.slane %v634_v45, %v5958_v21  ;;  %v649_v51 = vrot.slane %v5274_v46, %v5958_v21 }
 0x1f8   :  { %340 = vrot.lane.b32.xlu1 %v6000_v5, %s5897_s28  ;;  %1204 = vrot.lane.b32.xlu0 %v893_v16, %s5892_s23  ;;  %v650_v53 = vcombine.low %v625_v48, %v633_v49  ;;  %v651_v54 = vcombine.high %v625_v48, %v633_v49 }
 0x1f9   :  { %v666_v55 = vcombine.low %v641_v50, %v649_v51  ;;  %v667_v61 = vcombine.high %v641_v50, %v649_v51 }
 0x1fa   :  { %v6072_v7 = vrot.slane %v650_v53, %v5961_v27 }
 0x1fb   :  { %v6075_v8 = vrot.slane %v666_v55, %v5961_v27  ;;  %v6081_v14 = vrot.slane %v667_v61, %v5961_v27 }
 0x1fc   :  { %1200 = vrot.lane.b32.xlu1 %v304_v13, %s5892_s23 }
 0x1fd   :  { %v682_v29 = vcombine.low %v6072_v7, %v6075_v8  ;;  %v683_v30 = vcombine.high %v6072_v7, %v6075_v8 }
 0x200   :  { %1202 = vrot.lane.b32.xlu1 %v305_v10, %s5892_s23  ;;  %v6078_v10 = vrot.slane %v651_v54, %v5961_v27 }
 0x202   :  { %v684_v31 = vcombine.low %v6078_v10, %v6081_v14 }
 0x204   :  { %1208 = vrot.lane.b32.xlu1 %v897_v15, %s5892_s23 }
 0x208   :  { %1212 = vrot.lane.b32.xlu1 %v901_v18, %s5892_s23 }
 0x24e   :  { %v909_v62 = vpop.permute.xlu1 %908  ;;  %v913_v0 = vpop.permute.xlu0 %912 }
 0x24f   :  { %v928_v3 = vcombine.low %v905_v52, %v913_v0  ;;  %v929_v6 = vcombine.high %v905_v52, %v913_v0 }
 0x251   :  { %v936_v18 = vrot.slane %v928_v3, %v5958_v21  ;;  %v943_v23 = vrot.slane %v929_v6, %v5958_v21 }
 0x252   :  { %v917_v12 = vpop.permute.xlu1 %916  ;;  %v911_v13 = vpop.permute.xlu0 %910 }
 0x253   :  { %v944_v15 = vcombine.low %v909_v62, %v917_v12  ;;  %v945_v16 = vcombine.high %v909_v62, %v917_v12 }
 0x255   :  { %v952_v24 = vrot.slane %v944_v15, %v5958_v21  ;;  %v959_v25 = vrot.slane %v945_v16, %v5958_v21 }
 0x256   :  { %v915_v26 = vpop.permute.xlu1 %914  ;;  %v919_v28 = vpop.permute.xlu0 %918 }
 0x257   :  { %v960_v32 = vcombine.low %v936_v18, %v952_v24  ;;  %v961_v33 = vcombine.high %v936_v18, %v952_v24  ;;  %v976_v34 = vcombine.low %v943_v23, %v959_v25  ;;  %v977_v35 = vcombine.high %v943_v23, %v959_v25 }
 0x258   :  { %v996_v36 = vcombine.low %v907_v47, %v915_v26  ;;  %v997_v37 = vcombine.high %v907_v47, %v915_v26  ;;  %v1012_v38 = vcombine.low %v911_v13, %v919_v28  ;;  %v1013_v39 = vcombine.high %v911_v13, %v919_v28 }
 0x259   :  { %v968_v40 = vrot.slane %v960_v32, %v5961_v27  ;;  %v975_v41 = vrot.slane %v961_v33, %v5961_v27  ;;  %v984_v42 = vrot.slane %v976_v34, %v5961_v27  ;;  %v991_v43 = vrot.slane %v977_v35, %v5961_v27 }
 0x25a   :  { %v1004_v44 = vrot.slane %v996_v36, %v5958_v21  ;;  %v1011_v45 = vrot.slane %v997_v37, %v5958_v21  ;;  %v1020_v46 = vrot.slane %v1012_v38, %v5958_v21  ;;  %v1027_v48 = vrot.slane %v1013_v39, %v5958_v21  ;;  %v313_v49 = vpop.permute.xlu1 %312  ;;  %v325_v47 = vpop.permute.xlu0 %324 }
 0x25b   :  { %v1064_v50 = vcombine.low %v968_v40, %v975_v41  ;;  %v5281_v51 = vcombine.high %v968_v40, %v975_v41  ;;  %v1080_v52 = vcombine.low %v984_v42, %v991_v43  ;;  %v5282_v53 = vcombine.high %v984_v42, %v991_v43 }
 0x25c   :  { %v1028_v54 = vcombine.low %v1004_v44, %v1020_v46  ;;  %v1029_v55 = vcombine.high %v1004_v44, %v1020_v46  ;;  %v1044_v61 = vcombine.low %v1011_v45, %v1027_v48  ;;  %v1045_v62 = vcombine.high %v1011_v45, %v1027_v48 }
 0x25d   :  { %v6102_v0 = vrot.slane %v1064_v50, %v5958_v21  ;;  %v6105_v3 = vrot.slane %v5281_v51, %v5958_v21  ;;  %v6108_v6 = vrot.slane %v1080_v52, %v5958_v21  ;;  %v6111_v12 = vrot.slane %v5282_v53, %v5958_v21 }
 0x25e   :  { %v1036_v13 = vrot.slane %v1028_v54, %v5961_v27  ;;  %v1043_v15 = vrot.slane %v1029_v55, %v5961_v27  ;;  %v1052_v16 = vrot.slane %v1044_v61, %v5961_v27  ;;  %v1059_v18 = vrot.slane %v1045_v62, %v5961_v27  ;;  %v337_v23 = vpop.permute.xlu1 %336  ;;  %v315_v24 = vpop.permute.xlu0 %314 }
 0x25f   :  { %v1096_v25 = vcombine.low %v6102_v0, %v6105_v3  ;;  %v1097_v26 = vcombine.high %v6102_v0, %v6105_v3  ;;  %v1112_v28 = vcombine.low %v6108_v6, %v6111_v12  ;;  %v685_v32 = vcombine.high %v6078_v10, %v6081_v14 }
 0x260   :  { %v1132_v33 = vcombine.low %v1036_v13, %v1043_v15  ;;  %v5283_v34 = vcombine.high %v1036_v13, %v1043_v15  ;;  %v1148_v35 = vcombine.low %v1052_v16, %v1059_v18  ;;  %v5284_v36 = vcombine.high %v1052_v16, %v1059_v18 }
 0x261   :  { %v414_v37 = vcombine.low %v5998_v63, %v325_v47  ;;  %v415_v38 = vcombine.high %v5998_v63, %v325_v47  ;;  %v430_v39 = vcombine.low %v313_v49, %v337_v23  ;;  %v431_v40 = vcombine.high %v313_v49, %v337_v23 }
 0x262   :  { %v6128_v41 = vrot.slane %v1132_v33, %v5958_v21  ;;  %v6131_v42 = vrot.slane %v5283_v34, %v5958_v21  ;;  %v6134_v43 = vrot.slane %v1148_v35, %v5958_v21  ;;  %v6137_v44 = vrot.slane %v5284_v36, %v5958_v21  ;;  %v327_v45 = vpop.permute.xlu1 %326  ;;  %v339_v47 = vpop.permute.xlu0 %338 }
 0x263   :  { %v422_v46 = vrot.slane %v414_v37, %v5958_v21  ;;  %v429_v48 = vrot.slane %v415_v38, %v5958_v21  ;;  %v438_v63 = vrot.slane %v430_v39, %v5958_v21  ;;  %v445_v49 = vrot.slane %v431_v40, %v5958_v21 }
 0x264   :  { %v1113_v50 = vcombine.high %v6108_v6, %v6111_v12  ;;  %v1164_v51 = vcombine.low %v6128_v41, %v6131_v42  ;;  %v1165_v52 = vcombine.high %v6128_v41, %v6131_v42  ;;  %v1180_v53 = vcombine.low %v6134_v43, %v6137_v44 }
 0x265   :  { %v446_v54 = vcombine.low %v422_v46, %v438_v63  ;;  %v447_v55 = vcombine.high %v422_v46, %v438_v63  ;;  %v462_v61 = vcombine.low %v429_v48, %v445_v49  ;;  %v463_v62 = vcombine.high %v429_v48, %v445_v49 }
 0x266   :  { %v482_v13 = vcombine.low %v6002_v11, %v327_v45  ;;  %v483_v15 = vcombine.high %v6002_v11, %v327_v45  ;;  %v498_v16 = vcombine.low %v315_v24, %v339_v47  ;;  %v499_v18 = vcombine.high %v315_v24, %v339_v47  ;;  %v6153_v23 = vpop.permute.xlu1 %316 }
 0x267   :  { %v454_v33 = vrot.slane %v446_v54, %v5961_v27  ;;  %v461_v34 = vrot.slane %v447_v55, %v5961_v27  ;;  %v470_v35 = vrot.slane %v462_v61, %v5961_v27  ;;  %v477_v36 = vrot.slane %v463_v62, %v5961_v27 }
 0x268   :  { %v490_v37 = vrot.slane %v482_v13, %v5958_v21  ;;  %v497_v38 = vrot.slane %v483_v15, %v5958_v21  ;;  %v506_v39 = vrot.slane %v498_v16, %v5958_v21  ;;  %v513_v11 = vrot.slane %v499_v18, %v5958_v21 }
 0x269   :  { %v686_v24 = vcombine.low %v454_v33, %v461_v34  ;;  %v5275_v40 = vcombine.high %v454_v33, %v461_v34  ;;  %v702_v45 = vcombine.low %v470_v35, %v477_v36  ;;  %v5276_v46 = vcombine.high %v470_v35, %v477_v36  ;;  %v329_v34 = vpop.permute.xlu0 %328 }
 0x26a   :  { %v514_v48 = vcombine.low %v490_v37, %v506_v39  ;;  %v515_v63 = vcombine.high %v490_v37, %v506_v39  ;;  %v530_v49 = vcombine.low %v497_v38, %v513_v11  ;;  %v531_v47 = vcombine.high %v497_v38, %v513_v11  ;;  %v341_v54 = vpop.permute.xlu1 %340 }
 0x26b   :  { %v6164_v55 = vrot.slane %v686_v24, %v5958_v21  ;;  %v6167_v61 = vrot.slane %v5275_v40, %v5958_v21  ;;  %v6170_v62 = vrot.slane %v702_v45, %v5958_v21  ;;  %v6173_v13 = vrot.slane %v5276_v46, %v5958_v21 }
 0x26c   :  { %v522_v15 = vrot.slane %v514_v48, %v5961_v27  ;;  %v529_v16 = vrot.slane %v515_v63, %v5961_v27  ;;  %v538_v18 = vrot.slane %v530_v49, %v5961_v27  ;;  %v545_v33 = vrot.slane %v531_v47, %v5961_v27 }
 0x26d   :  { %v1181_v35 = vcombine.high %v6134_v43, %v6137_v44  ;;  %v718_v36 = vcombine.low %v6164_v55, %v6167_v61  ;;  %v719_v37 = vcombine.high %v6164_v55, %v6167_v61  ;;  %v734_v38 = vcombine.low %v6170_v62, %v6173_v13 }
 0x26e   :  { %v754_v39 = vcombine.low %v522_v15, %v529_v16  ;;  %v5277_v11 = vcombine.high %v522_v15, %v529_v16  ;;  %v770_v24 = vcombine.low %v538_v18, %v545_v33  ;;  %v5278_v40 = vcombine.high %v538_v18, %v545_v33  ;;  %v6187_v45 = vpop.permute.xlu1 %1200 }
 0x26f   :  { %v1104_v46 = vrot.slane %v1096_v25, %v5961_v27  ;;  %v1120_v48 = vrot.slane %v1112_v28, %v5961_v27  ;;  %v550_v63 = vcombine.low %v6000_v5, %v329_v34  ;;  %v551_v49 = vcombine.high %v6000_v5, %v329_v34 }
 0x270   :  { %v6200_v47 = vrot.slane %v754_v39, %v5958_v21  ;;  %v6203_v15 = vrot.slane %v5277_v11, %v5958_v21  ;;  %v6206_v16 = vrot.slane %v770_v24, %v5958_v21  ;;  %v6209_v25 = vrot.slane %v5278_v40, %v5958_v21 }
 0x271   :  { %v735_v18 = vcombine.high %v6170_v62, %v6173_v13  ;;  %v6213_v28 = vcombine.low %v1104_v46, %v1120_v48  ;;  %v6215_v33 = vcombine.high %v1104_v46, %v1120_v48  ;;  %v558_v5 = vrot.slane %v550_v63, %v5958_v21 }
 0x272   :  { %v786_v34 = vcombine.low %v6200_v47, %v6203_v15  ;;  %v787_v39 = vcombine.high %v6200_v47, %v6203_v15  ;;  %v802_v11 = vcombine.low %v6206_v16, %v6209_v25  ;;  %v565_v24 = vrot.slane %v551_v49, %v5958_v21  ;;  %v6238_v63 = vpop.permute.xlu1 %1202 }
 0x273   :  { %5478 = vmatpush3.xpose.msk.msra.mxu0 %vm1496_vm2, %v6213_v28  ;;  %5483 = vmatpush3.xpose.msk.msra.mxu1 %vm1496_vm2, %v6215_v33  ;;  %v1111_v40 = vrot.slane %v1097_v26, %v5961_v27  ;;  %v1127_v46 = vrot.slane %v1113_v50, %v5961_v27  ;;  %v566_v48 = vcombine.low %v6153_v23, %v341_v54 }
 0x274   :  { %5487 = vmatprep.subr.mxu1 %v5898_v22  ;;  %5492 = vmatprep.subr.mxu0 %v5898_v22  ;;  %v567_v49 = vcombine.high %v6153_v23, %v341_v54  ;;  %v1172_v0 = vrot.slane %v1164_v51, %v5961_v27  ;;  %v1188_v3 = vrot.slane %v1180_v53, %v5961_v27 }
 0x275   :  { %v6251_v6 = vcombine.low %v1111_v40, %v1127_v46  ;;  %v6253_v12 = vcombine.high %v1111_v40, %v1127_v46  ;;  %v574_v26 = vrot.slane %v566_v48, %v5958_v21  ;;  %v726_v50 = vrot.slane %v718_v36, %v5961_v27 }
 0x276   :  { %5480 = vmatmul.mubr.msk.f32.vlgmr.msra.gmra.mrb[4].mxu0 %vm1496_vm2, %v682_v29  ;;  %5485 = vmatmul.mubr.msk.f32.vlgmr.msra.gmra.mrb[0].mxu1 %vm1496_vm2, %v683_v30  ;;  %v581_v51 = vrot.slane %v567_v49, %v5958_v21  ;;  %v6266_v53 = vcombine.low %v1172_v0, %v1188_v3  ;;  %v6268_v23 = vcombine.high %v1172_v0, %v1188_v3 }
 0x277   :  { %5488 = vmatpush3.xpose.msk.msra.mxu1 %vm1496_vm2, %v6251_v6  ;;  %5493 = vmatpush3.xpose.msk.msra.mxu0 %vm1496_vm2, %v6253_v12  ;;  %v582_v54 = vcombine.low %v558_v5, %v574_v26  ;;  %v583_v36 = vcombine.high %v558_v5, %v574_v26  ;;  %v742_v29 = vrot.slane %v734_v38, %v5961_v27  ;;  %v1209_v5 = vpop.permute.xlu1 %1208 }
 0x278   :  { %v598_v40 = vcombine.low %v565_v24, %v581_v51  ;;  %v599_v7 = vcombine.high %v565_v24, %v581_v51  ;;  %5489 = vmatprep.mubr.msk.f32.mxu1 %vm5899_vm1, %v5898_v22  ;;  %5494 = vmatprep.mubr.msk.f32.mxu0 %vm5899_vm1, %v5898_v22  ;;  %v1179_v8 = vrot.slane %v1165_v52, %v5961_v27 }
 0x279   :  { %v590_v30 = vrot.slane %v582_v54, %v5961_v27  ;;  %v597_v46 = vrot.slane %v583_v36, %v5961_v27  ;;  %5497 = vmatprep.subr.mxu1 %v5898_v22  ;;  %5502 = vmatprep.subr.mxu0 %v5898_v22  ;;  %v750_v38 = vcombine.low %v726_v50, %v742_v29  ;;  %v1205_v36 = vpop.permute.xlu0 %1204 }
 0x27a   :  { %v606_v24 = vrot.slane %v598_v40, %v5961_v27  ;;  %v613_v48 = vrot.slane %v599_v7, %v5961_v27  ;;  %5490 = vmatmul.mubr.msk.f32.vlgmr.msra.gmra.mrb[2].mxu1 %vm1496_vm2, %v684_v31  ;;  %5495 = vmatmul.mubr.msk.f32.vlgmr.msra.gmra.mrb[6].mxu0 %vm1496_vm2, %v685_v32  ;;  %v751_v41 = vcombine.high %v726_v50, %v742_v29 }
 0x27b   :  { %v822_v42 = vcombine.low %v590_v30, %v597_v46  ;;  %v5279_v52 = vcombine.high %v590_v30, %v597_v46  ;;  %5498 = vmatpush3.xpose.msk.msra.mxu1 %vm1496_vm2, %v6266_v53  ;;  %5503 = vmatpush3.xpose.msk.msra.mxu0 %vm1496_vm2, %v6268_v23  ;;  %v1195_v49 = vrot.slane %v1181_v35, %v5961_v27  ;;  %v1213_v26 = vpop.permute.xlu1 %1212 }
 0x27c   :  { %v838_v31 = vcombine.low %v606_v24, %v613_v48  ;;  %v5280_v0 = vcombine.high %v606_v24, %v613_v48  ;;  %5499 = vmatprep.mubr.msk.f32.mxu1 %vm5899_vm1, %v5898_v22  ;;  %5504 = vmatprep.mubr.msk.f32.mxu0 %vm5899_vm1, %v5898_v22  ;;  %v733_v10 = vrot.slane %v719_v37, %v5961_v27 }
 0x27d   :  { %v6314_v14 = vrot.slane %v822_v42, %v5958_v21  ;;  %v6317_v32 = vrot.slane %v5279_v52, %v5958_v21  ;;  %5507 = vmatprep.subr.mxu1 %v5898_v22  ;;  %5512 = vmatprep.subr.mxu0 %v5898_v22  ;;  %v6321_v43 = vcombine.low %v1179_v8, %v1195_v49 }
 0x27e   :  { %v6324_v44 = vrot.slane %v838_v31, %v5958_v21  ;;  %v6327_v35 = vrot.slane %v5280_v0, %v5958_v21  ;;  %5500 = vmatmul.mubr.msk.f32.vlgmr.msra.gmra.mrb[4].mxu1 %vm1496_vm2, %v750_v38  ;;  %5505 = vmatmul.mubr.msk.f32.vlgmr.msra.gmra.mrb[8].mxu0 %vm1496_vm2, %v751_v41  ;;  %v6331_v55 = vcombine.high %v1179_v8, %v1195_v49 }
 0x27f   :  { %v803_v61 = vcombine.high %v6206_v16, %v6209_v25  ;;  %v854_v37 = vcombine.low %v6314_v14, %v6317_v32  ;;  %5508 = vmatpush3.xpose.msk.msra.mxu1 %vm1496_vm2, %v6321_v43  ;;  %5509 = vmatprep.mubr.msk.f32.mxu1 %vm5899_vm1, %v5898_v22  ;;  %v749_v3 = vrot.slane %v735_v18, %v5961_v27 }
 0x280   :  { %v855_v50 = vcombine.high %v6314_v14, %v6317_v32  ;;  %v870_v51 = vcombine.low %v6324_v44, %v6327_v35  ;;  %5513 = vmatpush3.xpose.msk.msra.mxu0 %vm1496_vm2, %v6331_v55  ;;  %5514 = vmatprep.mubr.msk.f32.mxu0 %vm5899_vm1, %v5898_v22  ;;  %v1224_v54 = vcombine.low %v6187_v45, %v1209_v5 }
 0x281   :  { %5517 = vmatprep.subr.mxu1 %v5898_v22  ;;  %5522 = vmatprep.subr.mxu0 %v5898_v22  ;;  %v752_v62 = vcombine.low %v733_v10, %v749_v3  ;;  %v753_v13 = vcombine.high %v733_v10, %v749_v3  ;;  %v1225_v18 = vcombine.high %v6187_v45, %v1209_v5 }
 0x282   :  { %v1232_v29 = vrot.slane %v1224_v54, %v5958_v21  ;;  %v794_v40 = vrot.slane %v786_v34, %v5961_v27  ;;  %v810_v7 = vrot.slane %v802_v11, %v5961_v27  ;;  %v1240_v8 = vcombine.low %v1205_v36, %v1213_v26 }
 0x283   :  { %5510 = vmatmul.mubr.msk.f32.vlgmr.msra.gmra.mrb[6].mxu1 %vm1496_vm2, %v752_v62  ;;  %5515 = vmatmul.mubr.msk.f32.vlgmr.msra.gmra.mrb[10].mxu0 %vm1496_vm2, %v753_v13  ;;  %v1239_v30 = vrot.slane %v1225_v18, %v5958_v21  ;;  %v1241_v45 = vcombine.high %v1205_v36, %v1213_v26  ;;  %v801_v46 = vrot.slane %v787_v39, %v5961_v27 }
 0x284   :  { %5518 = vmatpush3.xpose.msk.msra.mxu1 %vm1496_vm2, %v6213_v28  ;;  %5523 = vmatpush3.xpose.msk.msra.mxu0 %vm1496_vm2, %v6215_v33  ;;  %v818_v16 = vcombine.low %v794_v40, %v810_v7  ;;  %v819_v25 = vcombine.high %v794_v40, %v810_v7  ;;  %v1248_v34 = vrot.slane %v1240_v8, %v5958_v21 }
 0x285   :  { %5519 = vmatprep.mubr.msk.f32.mxu1 %vm5899_vm1, %v5898_v22  ;;  %5524 = vmatprep.mubr.msk.f32.mxu0 %vm5899_vm1, %v5898_v22  ;;  %v1255_v11 = vrot.slane %v1241_v45, %v5958_v21  ;;  %v817_v47 = vrot.slane %v803_v61, %v5961_v27  ;;  %v862_v15 = vrot.slane %v854_v37, %v5961_v27 }
 0x286   :  { %5527 = vmatprep.subr.mxu1 %v5898_v22  ;;  %5532 = vmatprep.subr.mxu0 %v5898_v22  ;;  %v1256_v28 = vcombine.low %v1232_v29, %v1248_v34  ;;  %v1257_v33 = vcombine.high %v1232_v29, %v1248_v34  ;;  %v878_v39 = vrot.slane %v870_v51, %v5961_v27 }
 0x287   :  { %v871_v38 = vcombine.high %v6324_v44, %v6327_v35  ;;  %5520 = vmatmul.mubr.msk.f32.vlgmr.msra.gmra.mrb[8].mxu1 %vm1496_vm2, %v818_v16  ;;  %5525 = vmatmul.mubr.msk.f32.vlgmr.msra.gmra.mrb[12].mxu0 %vm1496_vm2, %v819_v25  ;;  %v1272_v5 = vcombine.low %v1239_v30, %v1255_v11  ;;  %v1273_v24 = vcombine.high %v1239_v30, %v1255_v11 }
 0x288   :  { %5528 = vmatpush3.xpose.msk.msra.mxu1 %vm1496_vm2, %v6251_v6  ;;  %5533 = vmatpush3.xpose.msk.msra.mxu0 %vm1496_vm2, %v6253_v12  ;;  %v1264_v48 = vrot.slane %v1256_v28, %v5961_v27  ;;  %v1271_v41 = vrot.slane %v1257_v33, %v5961_v27  ;;  %v820_v42 = vcombine.low %v801_v46, %v817_v47 }
 0x289   :  { %v1280_v52 = vrot.slane %v1272_v5, %v5961_v27  ;;  %v1287_v49 = vrot.slane %v1273_v24, %v5961_v27  ;;  %5529 = vmatprep.mubr.msk.f32.mxu1 %vm5899_vm1, %v5898_v22  ;;  %5534 = vmatprep.mubr.msk.f32.mxu0 %vm5899_vm1, %v5898_v22  ;;  %v821_v31 = vcombine.high %v801_v46, %v817_v47 }
 0x28a   :  { %v1360_v6 = vcombine.low %v1264_v48, %v1271_v41  ;;  %v5285_v0 = vcombine.high %v1264_v48, %v1271_v41  ;;  %5537 = vmatprep.subr.mxu1 %v5898_v22  ;;  %5542 = vmatprep.subr.mxu0 %v5898_v22  ;;  %v886_v12 = vcombine.low %v862_v15, %v878_v39 }
 0x28b   :  { %v1376_v10 = vcombine.low %v1280_v52, %v1287_v49  ;;  %v5286_v14 = vcombine.high %v1280_v52, %v1287_v49  ;;  %5530 = vmatmul.mubr.msk.f32.vlgmr.msra.gmra.mrb[10].mxu1 %vm1496_vm2, %v820_v42  ;;  %5535 = vmatmul.mubr.msk.f32.vlgmr.msra.gmra.mrb[14].mxu0 %vm1496_vm2, %v821_v31  ;;  %v869_v32 = vrot.slane %v855_v50, %v5961_v27 }
 0x28c   :  { %v1367_v44 = vrot.slane %v1360_v6, %v5958_v21  ;;  %v1375_v35 = vrot.slane %v5285_v0, %v5958_v21  ;;  %5538 = vmatpush3.xpose.msk.msra.mxu1 %vm1496_vm2, %v6266_v53  ;;  %5543 = vmatpush3.xpose.msk.msra.mxu0 %vm1496_vm2, %v6268_v23  ;;  %v885_v61 = vrot.slane %v871_v38, %v5961_v27 }
 0x28d   :  { %v1383_v37 = vrot.slane %v1376_v10, %v5958_v21  ;;  %v1391_v3 = vrot.slane %v5286_v14, %v5958_v21  ;;  %5539 = vmatprep.mubr.msk.f32.mxu1 %vm5899_vm1, %v5898_v22  ;;  %5544 = vmatprep.mubr.msk.f32.mxu0 %vm5899_vm1, %v5898_v22  ;;  %v887_v26 = vcombine.high %v862_v15, %v878_v39 }
 0x28e   :  { %5547 = vmatprep.subr.mxu1 %v5898_v22  ;;  %5552 = vmatprep.subr.mxu0 %v5898_v22  ;;  %v1392_v53 = vcombine.low %v1367_v44, %v1375_v35  ;;  %v1393_v50 = vcombine.high %v1367_v44, %v1375_v35  ;;  %v888_v54 = vcombine.low %v869_v32, %v885_v61 }
 0x28f   :  { %5540 = vmatmul.mubr.msk.f32.vlgmr.msra.gmra.mrb[12].mxu1 %vm1496_vm2, %v886_v12  ;;  %5545 = vmatmul.mubr.msk.f32.vlgmr.msra.gmra.mrb[16].mxu0 %vm1496_vm2, %v887_v26  ;;  %v1408_v23 = vcombine.low %v1383_v37, %v1391_v3  ;;  %v1409_v51 = vcombine.high %v1383_v37, %v1391_v3  ;;  %v889_v36 = vcombine.high %v869_v32, %v885_v61 }
 0x290   :  { %5548 = vmatpush3.xpose.msk.msra.mxu1 %vm1496_vm2, %v6321_v43  ;;  %5553 = vmatpush3.xpose.msk.msra.mxu0 %vm1496_vm2, %v6331_v55  ;;  %v1400_v62 = vrot.slane %v1392_v53, %v5961_v27  ;;  %v1407_v18 = vrot.slane %v1393_v50, %v5961_v27 }
 0x291   :  { %5549 = vmatprep.mubr.msk.f32.mxu1 %vm5899_vm1, %v5898_v22  ;;  %5554 = vmatprep.mubr.msk.f32.mxu0 %vm5899_vm1, %v5898_v22  ;;  %v1416_v13 = vrot.slane %v1408_v23, %v5961_v27  ;;  %v1423_v29 = vrot.slane %v1409_v51, %v5961_v27 }
 0x292   :  { %5557 = vmatprep.subr.mxu1 %v5898_v22  ;;  %5562 = vmatprep.subr.mxu0 %v5898_v22 }
 0x293   :  { %5550 = vmatmul.mubr.msk.f32.vlgmr.msra.gmra.mrb[14].mxu1 %vm1496_vm2, %v888_v54  ;;  %5555 = vmatmul.mubr.msk.f32.vlgmr.msra.gmra.mrb[18].mxu0 %vm1496_vm2, %v889_v36  ;;  %v6442_v43 = vcombine.low %v1400_v62, %v1416_v13  ;;  %v6444_v55 = vcombine.high %v1400_v62, %v1416_v13  ;;  %v6446_v40 = vcombine.low %v1407_v18, %v1423_v29 }
 0x294   :  { %5559 = vmatprep.mubr.msk.f32.mxu1 %vm5899_vm1, %v5898_v22  ;;  %5564 = vmatprep.mubr.msk.f32.mxu0 %vm5899_vm1, %v5898_v22  ;;  %v6452_v7 = vcombine.high %v1407_v18, %v1423_v29 }
 0x295   :  { %5558 = vmatpush3.msra.mxu1 %v6442_v43  ;;  %5563 = vmatpush3.msra.mxu0 %v6444_v55 }
 0x296   :  { %5567 = vmatprep.subr.mxu1 %v5898_v22  ;;  %5572 = vmatprep.subr.mxu0 %v5898_v22 }
 0x349   :  { %v6458_v8 = vpop.f32.mrb[4].mxu0  ;;  %v6460_v30 = vpop.f32.mrb[0].mxu1 }
 0x34a   :  { %v5481_v45 = vpop.f32.mrb[5].mxu0  ;;  %v5486_v46 = vpop.f32.mrb[1].mxu1  ;;  %v2692_v16 = vsel %vm1496_vm2, %v6460_v30, -inf  ;;  %v2689_v25 = vsel %vm1496_vm2, %v6458_v8, -inf }
 0x34b   :  { %2693 = vmax.xlane.f32.xlu1 %v2692_v16  ;;  %2690 = vmax.xlane.f32.xlu0 %v2689_v25 }
 0x34d   :  { %v6466_v34 = vpop.f32.mrb[2].mxu1  ;;  %v6468_v11 = vpop.f32.mrb[6].mxu0 }
 0x34e   :  { %v5491_v47 = vpop.f32.mrb[3].mxu1  ;;  %v5496_v15 = vpop.f32.mrb[7].mxu0  ;;  %v2695_v28 = vsel %vm1496_vm2, %v6466_v34, -inf  ;;  %v2698_v24 = vsel %vm1496_vm2, %v6468_v11, -inf }
 0x34f   :  { %2696 = vmax.xlane.f32.xlu0 %v2695_v28 }
 0x351   :  { %v6472_v33 = vpop.f32.mrb[4].mxu1  ;;  %v6474_v39 = vpop.f32.mrb[8].mxu0 }
 0x352   :  { %v5501_v38 = vpop.f32.mrb[5].mxu1  ;;  %v5506_v5 = vpop.f32.mrb[9].mxu0  ;;  %v2701_v48 = vsel %vm1496_vm2, %v6472_v33, -inf  ;;  %v2704_v52 = vsel %vm1496_vm2, %v6474_v39, -inf }
 0x353   :  { %2699 = vmax.xlane.f32.xlu0 %v2698_v24  ;;  %2702 = vmax.xlane.f32.xlu1 %v2701_v48 }
 0x356   :  { %v6480_v41 = vpop.f32.mrb[6].mxu1  ;;  %v6482_v42 = vpop.f32.mrb[10].mxu0 }
 0x357   :  { %v5511_v49 = vpop.f32.mrb[7].mxu1  ;;  %v5516_v31 = vpop.f32.mrb[11].mxu0  ;;  %2705 = vmax.xlane.f32.xlu0 %v2704_v52  ;;  %v2707_v6 = vsel %vm1496_vm2, %v6480_v41, -inf  ;;  %v2710_v10 = vsel %vm1496_vm2, %v6482_v42, -inf }
 0x358   :  { %2708 = vmax.xlane.f32.xlu1 %v2707_v6 }
 0x35a   :  { %v6488_v0 = vpop.f32.mrb[8].mxu1  ;;  %v6490_v12 = vpop.f32.mrb[12].mxu0 }
 0x35b   :  { %2711 = vmax.xlane.f32.xlu0 %v2710_v10  ;;  %v5521_v14 = vpop.f32.mrb[9].mxu1  ;;  %v5526_v32 = vpop.f32.mrb[13].mxu0  ;;  %v2713_v44 = vsel %vm1496_vm2, %v6488_v0, -inf  ;;  %v2716_v37 = vsel %vm1496_vm2, %v6490_v12, -inf }
 0x35c   :  { %2714 = vmax.xlane.f32.xlu1 %v2713_v44 }
 0x35e   :  { %v6496_v35 = vpop.f32.mrb[10].mxu1  ;;  %v6498_v61 = vpop.f32.mrb[14].mxu0 }
 0x35f   :  { %2717 = vmax.xlane.f32.xlu0 %v2716_v37  ;;  %v5531_v3 = vpop.f32.mrb[11].mxu1  ;;  %v5536_v26 = vpop.f32.mrb[15].mxu0  ;;  %v2719_v53 = vsel %vm1496_vm2, %v6496_v35, -inf  ;;  %v2722_v51 = vsel %vm1496_vm2, %v6498_v61, -inf }
 0x360   :  { %2720 = vmax.xlane.f32.xlu1 %v2719_v53 }
 0x362   :  { %v6504_v23 = vpop.f32.mrb[12].mxu1  ;;  %v6506_v50 = vpop.f32.mrb[16].mxu0 }
 0x363   :  { %2723 = vmax.xlane.f32.xlu0 %v2722_v51  ;;  %v5541_v54 = vpop.f32.mrb[13].mxu1  ;;  %v5546_v36 = vpop.f32.mrb[17].mxu0  ;;  %v2725_v62 = vsel %vm1496_vm2, %v6504_v23, -inf  ;;  %v2728_v29 = vsel %vm1496_vm2, %v6506_v50, -inf }
 0x364   :  { %2726 = vmax.xlane.f32.xlu1 %v2725_v62 }
 0x366   :  { %v6512_v13 = vpop.f32.mrb[14].mxu1  ;;  %v6514_v18 = vpop.f32.mrb[18].mxu0 }
 0x367   :  { %2729 = vmax.xlane.f32.xlu0 %v2728_v29  ;;  %v5551_v45 = vpop.f32.mrb[15].mxu1  ;;  %v5556_v46 = vpop.f32.mrb[19].mxu0  ;;  %v2731_v16 = vsel %vm1496_vm2, %v6512_v13, -inf  ;;  %v2734_v25 = vsel %vm1496_vm2, %v6514_v18, -inf }
 0x368   :  { %2732 = vmax.xlane.f32.xlu1 %v2731_v16 }
 0x36b   :  { %2735 = vmax.xlane.f32.xlu0 %v2734_v25 }
 0x379   :  { %1210 = vrot.lane.b32.xlu1 %v6024_v20, %s5892_s23 }
 0x381   :  { %1206 = vrot.lane.b32.xlu0 %v6017_v17, %s5892_s23 }
 0x3d8   :  { %v2694_v47 = vpop.xlane.xlu1 %2693  ;;  %v2691_v15 = vpop.xlane.xlu0 %2690 }
 0x3d9   :  { %v2738_v28 = vsub.f32 %v6460_v30, %v2694_v47  ;;  %v2737_v38 = vsub.f32 %v6458_v8, %v2691_v15 }
 0x3db   :  { %v2755_v5 = vmul.f32 1.442695, %v2738_v28  ;;  %v2753_v24 = vmul.f32 1.442695, %v2737_v38 }
 0x3dc   :  { %v2697_v48 = vpop.xlane.xlu0 %2696 }
 0x3dd   :  { %5783 = vpow2.f32 %v2755_v5  ;;  %v2739_v52 = vsub.f32 %v6466_v34, %v2697_v48 }
 0x3de   :  { %5785 = vpow2.f32 %v2753_v24 }
 0x3df   :  { %v2757_v49 = vmul.f32 1.442695, %v2739_v52 }
 0x3e0   :  { %v2700_v31 = vpop.xlane.xlu0 %2699  ;;  %v2703_v6 = vpop.xlane.xlu1 %2702 }
 0x3e1   :  { %5787 = vpow2.f32 %v2757_v49  ;;  %v2740_v20 = vsub.f32 %v6468_v11, %v2700_v31  ;;  %v2741_v17 = vsub.f32 %v6472_v33, %v2703_v6 }
 0x3e3   :  { %v2759_v10 = vmul.f32 1.442695, %v2740_v20  ;;  %v2761_v14 = vmul.f32 1.442695, %v2741_v17 }
 0x3e4   :  { %v2706_v30 = vpop.xlane.xlu0 %2705 }
 0x3e5   :  { %5789 = vpow2.f32 %v2759_v10  ;;  %v2742_v8 = vsub.f32 %v6474_v39, %v2706_v30  ;;  %v2709_v32 = vpop.xlane.xlu1 %2708 }
 0x3e6   :  { %v2743_v44 = vsub.f32 %v6480_v41, %v2709_v32  ;;  %5791 = vpow2.f32 %v2761_v14 }
 0x3e7   :  { %v6533_v37 = vpop.eup %5783  ;;  %v2763_v34 = vmul.f32 1.442695, %v2742_v8 }
 0x3e8   :  { %v6535_v3 = vpop.eup %5785  ;;  %v2765_v26 = vmul.f32 1.442695, %v2743_v44  ;;  %v2712_v53 = vpop.xlane.xlu0 %2711  ;;  %v2788_v11 = vsel %vm1496_vm2, %v6533_v37, 0.0 }
 0x3e9   :  { %5793 = vpow2.f32 %v2763_v34  ;;  %v2744_v33 = vsub.f32 %v6482_v42, %v2712_v53  ;;  %v2715_v51 = vpop.xlane.xlu1 %2714  ;;  %2789 = vadd.xlane.f32.xlu0 %v2788_v11  ;;  %v2785_v39 = vsel %vm1496_vm2, %v6535_v3, 0.0 }
 0x3ea   :  { %2786 = vadd.xlane.f32.xlu1 %v2785_v39  ;;  %5795 = vpow2.f32 %v2765_v26  ;;  %v2745_v36 = vsub.f32 %v6488_v0, %v2715_v51 }
 0x3eb   :  { %v6542_v41 = vpop.eup %5787  ;;  %v2767_v54 = vmul.f32 1.442695, %v2744_v33 }
 0x3ec   :  { %v2718_v62 = vpop.xlane.xlu0 %2717  ;;  %v2791_v29 = vsel %vm1496_vm2, %v6542_v41, 0.0  ;;  %v2769_v42 = vmul.f32 1.442695, %v2745_v36 }
 0x3ed   :  { %v2721_v45 = vpop.xlane.xlu1 %2720  ;;  %5797 = vpow2.f32 %v2767_v54  ;;  %v2746_v51 = vsub.f32 %v6490_v12, %v2718_v62 }
 0x3ee   :  { %2792 = vadd.xlane.f32.xlu1 %v2791_v29  ;;  %v2747_v16 = vsub.f32 %v6496_v35, %v2721_v45  ;;  %5799 = vpow2.f32 %v2769_v42 }
 0x3ef   :  { %v6547_v46 = vpop.eup %5789 }
 0x3f0   :  { %v2724_v25 = vpop.xlane.xlu0 %2723  ;;  %v2794_v47 = vsel %vm1496_vm2, %v6547_v46, 0.0  ;;  %v6552_v15 = vpop.eup %5791  ;;  %v2773_v28 = vmul.f32 1.442695, %v2747_v16 }
 0x3f1   :  { %2795 = vadd.xlane.f32.xlu0 %v2794_v47  ;;  %v2748_v38 = vsub.f32 %v6498_v61, %v2724_v25  ;;  %v2797_v24 = vsel %vm1496_vm2, %v6552_v15, 0.0  ;;  %v2727_v33 = vpop.xlane.xlu1 %2726 }
 0x3f2   :  { %5801 = vpow2.f32 %v2773_v28  ;;  %v2749_v39 = vsub.f32 %v6504_v23, %v2727_v33 }
 0x3f3   :  { %v6554_v0 = vpop.eup %5793  ;;  %v2775_v52 = vmul.f32 1.442695, %v2748_v38 }
 0x3f4   :  { %v2730_v5 = vpop.xlane.xlu0 %2729  ;;  %v2800_v35 = vsel %vm1496_vm2, %v6554_v0, 0.0  ;;  %v6561_v48 = vpop.eup %5795  ;;  %v2777_v36 = vmul.f32 1.442695, %v2749_v39 }
 0x3f5   :  { %2798 = vadd.xlane.f32.xlu0 %v2797_v24  ;;  %2801 = vadd.xlane.f32.xlu1 %v2800_v35  ;;  %v2750_v49 = vsub.f32 %v6506_v50, %v2730_v5  ;;  %v2803_v6 = vsel %vm1496_vm2, %v6561_v48, 0.0  ;;  %5803 = vpow2.f32 %v2775_v52  ;;  %v2733_v54 = vpop.xlane.xlu1 %2732 }
 0x3f6   :  { %v2751_v29 = vsub.f32 %v6512_v13, %v2733_v54 }
 0x3f7   :  { %v6566_v61 = vpop.eup %5797  ;;  %v2779_v20 = vmul.f32 1.442695, %v2750_v49 }
 0x3f8   :  { %v2736_v31 = vpop.xlane.xlu0 %2735  ;;  %v2806_v10 = vsel %vm1496_vm2, %v6566_v61, 0.0  ;;  %v6571_v14 = vpop.eup %5799  ;;  %v2781_v45 = vmul.f32 1.442695, %v2751_v29 }
 0x3f9   :  { %2804 = vadd.xlane.f32.xlu0 %v2803_v6  ;;  %v2752_v17 = vsub.f32 %v6514_v18, %v2736_v31  ;;  %5805 = vpow2.f32 %v2779_v20  ;;  %v2809_v50 = vsel %vm1496_vm2, %v6571_v14, 0.0  ;;  %v1211_v47 = vpop.permute.xlu1 %1210 }
 0x3fa   :  { %v1292_v1 = vcombine.low %v6238_v63, %v1211_v47  ;;  %v1293_v2 = vcombine.high %v6238_v63, %v1211_v47 }
 0x3fb   :  { %v2783_v30 = vmul.f32 1.442695, %v2752_v17 }
 0x3fc   :  { %v6575_v8 = vpop.eup %5801  ;;  %v1207_v62 = vpop.permute.xlu0 %1206 }
 0x3fd   :  { %2807 = vadd.xlane.f32.xlu0 %v2806_v10  ;;  %5807 = vpow2.f32 %v2783_v30  ;;  %v2815_v32 = vsel %vm1496_vm2, %v6575_v8, 0.0 }
 0x3ff   :  { %v6579_v44 = vpop.eup %5803 }
 0x400   :  { %v2818_v18 = vsel %vm1496_vm2, %v6579_v44, 0.0 }
 0x401   :  { %2810 = vadd.xlane.f32.xlu0 %v2809_v50  ;;  %v1300_v50 = vrot.slane %v1292_v1, %v5958_v21 }
 0x403   :  { %v6585_v34 = vpop.eup %5805 }
 0x404   :  { %v2824_v26 = vsel %vm1496_vm2, %v6585_v34, 0.0 }
 0x405   :  { %2816 = vadd.xlane.f32.xlu0 %v2815_v32  ;;  %v1307_v32 = vrot.slane %v1293_v2, %v5958_v21 }
 0x406   :  { %1214 = vrot.lane.b32.xlu1 %v6022_v19, %s5892_s23  ;;  %v2771_v19 = vmul.f32 1.442695, %v2746_v51 }
 0x407   :  { %v6589_v53 = vpop.eup %5807 }
 0x408   :  { %v2830_v11 = vsel %vm1496_vm2, %v6589_v53, 0.0  ;;  %5809 = vpow2.f32 %v2771_v19 }
 0x409   :  { %2819 = vadd.xlane.f32.xlu0 %v2818_v18  ;;  %5811 = vpow2.f32 %v2777_v36 }
 0x40a   :  { %5813 = vpow2.f32 %v2781_v45 }
 0x40d   :  { %2825 = vadd.xlane.f32.xlu0 %v2824_v26 }
 0x411   :  { %2831 = vadd.xlane.f32.xlu0 %v2830_v11 }
 0x412   :  { %v6596_v42 = vpop.eup %5809 }
 0x413   :  { %v2812_v16 = vsel %vm1496_vm2, %v6596_v42, 0.0  ;;  %v6600_v25 = vpop.eup %5811 }
 0x414   :  { %v2821_v12 = vsel %vm1496_vm2, %v6600_v25, 0.0  ;;  %v6604_v23 = vpop.eup %5813 }
 0x415   :  { %v2827_v13 = vsel %vm1496_vm2, %v6604_v23, 0.0 }
 0x42a   :  { %2813 = vadd.xlane.f32.xlu1 %v2812_v16 }
 0x42e   :  { %2822 = vadd.xlane.f32.xlu1 %v2821_v12 }
 0x432   :  { %2828 = vadd.xlane.f32.xlu1 %v2827_v13 }
 0x443   :  { %5774 = vrot.lane.b32.xlu1 %v5773_v4, %s5890_s16 }
 0x476   :  { %v2790_v28 = vpop.xlane.xlu0 %2789 }
 0x477   :  { %v2787_v38 = vpop.xlane.xlu1 %2786  ;;  %5815 = vrcp.f32 %v2790_v28 }
 0x478   :  { %5817 = vrcp.f32 %v2787_v38 }
 0x47b   :  { %v2793_v5 = vpop.xlane.xlu1 %2792 }
 0x47c   :  { %5819 = vrcp.f32 %v2793_v5 }
 0x47e   :  { %v2796_v24 = vpop.xlane.xlu0 %2795 }
 0x47f   :  { %5821 = vrcp.f32 %v2796_v24 }
 0x481   :  { %v5816_v35 = vpop.eup %5815 }
 0x482   :  { %v5818_v52 = vpop.eup %5817  ;;  %v2836_v49 = vmul.f32 %v5816_v35, %v6533_v37  ;;  %v2802_v31 = vpop.xlane.xlu1 %2801 }
 0x483   :  { %v2799_v6 = vpop.xlane.xlu0 %2798  ;;  %v2834_v20 = vmul.f32 %v5818_v52, %v6535_v3  ;;  %5823 = vrcp.f32 %v2802_v31 }
 0x484   :  { %5565 = vmatmul.mubr.msk.f32.vlgmr.msra.gmra.mrb[20].mxu0 %vm1496_vm2, %v2836_v49  ;;  %5825 = vrcp.f32 %v2799_v6 }
 0x485   :  { %5560 = vmatmul.mubr.msk.f32.vlgmr.msra.gmra.mrb[16].mxu1 %vm1496_vm2, %v2834_v20  ;;  %5573 = vmatpush3.msra.mxu0 %v6452_v7 }
 0x486   :  { %v5820_v4 = vpop.eup %5819  ;;  %5568 = vmatpush3.msra.mxu1 %v6446_v40  ;;  %v1215_v17 = vpop.permute.xlu1 %1214  ;;  %5569 = vmatprep.mubr.msk.f32.mxu1 %vm5899_vm1, %v5898_v22 }
 0x487   :  { %v2805_v10 = vpop.xlane.xlu0 %2804  ;;  %v2838_v37 = vmul.f32 %v5820_v4, %v6542_v41  ;;  %v1308_v3 = vcombine.low %v1207_v62, %v1215_v17  ;;  %v1309_v30 = vcombine.high %v1207_v62, %v1215_v17  ;;  %5574 = vmatprep.mubr.msk.f32.mxu0 %vm5899_vm1, %v5898_v22  ;;  %5577 = vmatprep.subr.mxu1 %v5898_v22 }
 0x488   :  { %5582 = vmatprep.subr.mxu0 %v5898_v22  ;;  %5827 = vrcp.f32 %v2805_v10 }
 0x489   :  { %v5822_v63 = vpop.eup %5821  ;;  %v1316_v18 = vrot.slane %v1308_v3, %v5958_v21  ;;  %v1323_v26 = vrot.slane %v1309_v30, %v5958_v21  ;;  %5570 = vmatmul.mubr.msk.f32.vlgmr.msra.gmra.mrb[18].mxu1 %vm1496_vm2, %v2838_v37 }
 0x48a   :  { %v2840_v41 = vmul.f32 %v5822_v63, %v6547_v46  ;;  %5579 = vmatprep.mubr.msk.f32.mxu1 %vm5899_vm1, %v5898_v22 }
 0x48b   :  { %v2808_v11 = vpop.xlane.xlu0 %2807  ;;  %v1324_v33 = vcombine.low %v1300_v50, %v1316_v18  ;;  %v1325_v51 = vcombine.high %v1300_v50, %v1316_v18  ;;  %v1340_v19 = vcombine.low %v1307_v32, %v1323_v26  ;;  %v1341_v39 = vcombine.high %v1307_v32, %v1323_v26 }
 0x48c   :  { %5575 = vmatmul.mubr.msk.f32.vlgmr.msra.gmra.mrb[22].mxu0 %vm1496_vm2, %v2840_v41  ;;  %5829 = vrcp.f32 %v2808_v11 }
 0x48d   :  { %v1332_v54 = vrot.slane %v1324_v33, %v5961_v27  ;;  %v1339_v36 = vrot.slane %v1325_v51, %v5961_v27  ;;  %v1348_v29 = vrot.slane %v1340_v19, %v5961_v27  ;;  %v1355_v46 = vrot.slane %v1341_v39, %v5961_v27  ;;  %5584 = vmatprep.mubr.msk.f32.mxu0 %vm5899_vm1, %v5898_v22  ;;  %v5824_v52 = vpop.eup %5823 }
 0x48e   :  { %v5826_v20 = vpop.eup %5825  ;;  %v2844_v3 = vmul.f32 %v5824_v52, %v6554_v0 }
 0x48f   :  { %v1428_v45 = vcombine.low %v1332_v54, %v1339_v36  ;;  %v5287_v16 = vcombine.high %v1332_v54, %v1339_v36  ;;  %v1444_v12 = vcombine.low %v1348_v29, %v1355_v46  ;;  %v5288_v13 = vcombine.high %v1348_v29, %v1355_v46  ;;  %v2811_v62 = vpop.xlane.xlu0 %2810 }
 0x490   :  { %5831 = vrcp.f32 %v2811_v62  ;;  %v2842_v30 = vmul.f32 %v5826_v20, %v6552_v15 }
 0x491   :  { %v1435_v47 = vrot.slane %v1428_v45, %v5958_v21  ;;  %v1443_v28 = vrot.slane %v5287_v16, %v5958_v21  ;;  %v1451_v38 = vrot.slane %v1444_v12, %v5958_v21  ;;  %v1459_v5 = vrot.slane %v5288_v13, %v5958_v21 }
 0x492   :  { %v5828_v63 = vpop.eup %5827 }
 0x493   :  { %v1460_v24 = vcombine.low %v1435_v47, %v1443_v28  ;;  %v1461_v35 = vcombine.high %v1435_v47, %v1443_v28  ;;  %v1476_v49 = vcombine.low %v1451_v38, %v1459_v5  ;;  %v1477_v31 = vcombine.high %v1451_v38, %v1459_v5  ;;  %v2817_v1 = vpop.xlane.xlu0 %2816 }
 0x494   :  { %5833 = vrcp.f32 %v2817_v1  ;;  %v2846_v15 = vmul.f32 %v5828_v63, %v6561_v48 }
 0x495   :  { %v1468_v6 = vrot.slane %v1460_v24, %v5961_v27  ;;  %v1484_v2 = vrot.slane %v1476_v49, %v5961_v27  ;;  %v1475_v4 = vrot.slane %v1461_v35, %v5961_v27  ;;  %v1491_v17 = vrot.slane %v1477_v31, %v5961_v27 }
 0x496   :  { %v5830_v50 = vpop.eup %5829 }
 0x497   :  { %v1492_v10 = vcombine.low %v1468_v6, %v1484_v2  ;;  %v6650_v37 = vcombine.high %v1468_v6, %v1484_v2  ;;  %v1494_v32 = vcombine.low %v1475_v4, %v1491_v17  ;;  %v6657_v18 = vcombine.high %v1475_v4, %v1491_v17 }
 0x498   :  { %v2848_v0 = vmul.f32 %v5830_v50, %v6566_v61 }
 0x499   :  { %5578 = vmatpush3.msra.mxu1 %v1492_v10  ;;  %5583 = vmatpush3.msra.mxu0 %v6650_v37 }
 0x49a   :  { %5580 = vmatmul.mubr.msk.f32.vlgmr.msra.gmra.mrb[20].mxu1 %vm1496_vm2, %v2842_v30  ;;  %5585 = vmatmul.mubr.msk.f32.vlgmr.msra.gmra.mrb[24].mxu0 %vm1496_vm2, %v2844_v3  ;;  %v5832_v26 = vpop.eup %5831 }
 0x49b   :  { %5587 = vmatprep.subr.mxu1 %v5898_v22  ;;  %5592 = vmatprep.subr.mxu0 %v5898_v22  ;;  %v2850_v48 = vmul.f32 %v5832_v26, %v6571_v14 }
 0x49c   :  { %5588 = vmatpush3.msra.mxu1 %v1494_v32  ;;  %5593 = vmatpush3.msra.mxu0 %v6657_v18 }
 0x49d   :  { %5589 = vmatprep.mubr.msk.f32.mxu1 %vm5899_vm1, %v5898_v22  ;;  %5594 = vmatprep.mubr.msk.f32.mxu0 %vm5899_vm1, %v5898_v22 }
 0x49e   :  { %5597 = vmatprep.subr.mxu1 %v5898_v22  ;;  %5602 = vmatprep.subr.mxu0 %v5898_v22  ;;  %v5834_v61 = vpop.eup %5833 }
 0x49f   :  { %5590 = vmatmul.mubr.msk.f32.vlgmr.msra.gmra.mrb[22].mxu1 %vm1496_vm2, %v2846_v15  ;;  %5595 = vmatmul.mubr.msk.f32.vlgmr.msra.gmra.mrb[26].mxu0 %vm1496_vm2, %v2848_v0 }
 0x4a0   :  { %5598 = vmatpush3.msra.mxu1 %v6442_v43  ;;  %5603 = vmatpush3.msra.mxu0 %v6444_v55  ;;  %v2854_v43 = vmul.f32 %v5834_v61, %v6575_v8  ;;  %v2820_v55 = vpop.xlane.xlu0 %2819 }
 0x4a1   :  { %5599 = vmatprep.mubr.msk.f32.mxu1 %vm5899_vm1, %v5898_v22  ;;  %5607 = vmatprep.subr.mxu1 %v5898_v22 }
 0x4a2   :  { %5604 = vmatprep.mubr.msk.f32.mxu0 %vm5899_vm1, %v5898_v22  ;;  %5612 = vmatprep.subr.mxu0 %v5898_v22 }
 0x4a3   :  { %5600 = vmatmul.mubr.msk.f32.vlgmr.msra.gmra.mrb[24].mxu1 %vm1496_vm2, %v2850_v48 }
 0x4a4   :  { %5608 = vmatpush3.msra.mxu1 %v6446_v40  ;;  %5609 = vmatprep.mubr.msk.f32.mxu1 %vm5899_vm1, %v5898_v22  ;;  %v2826_v41 = vpop.xlane.xlu0 %2825 }
 0x4a5   :  { %5617 = vmatprep.subr.mxu1 %v5898_v22 }
 0x4a7   :  { %5610 = vmatmul.mubr.msk.f32.vlgmr.msra.gmra.mrb[26].mxu1 %vm1496_vm2, %v2854_v43 }
 0x4a8   :  { %5618 = vmatpush3.msra.mxu1 %v1492_v10  ;;  %5619 = vmatprep.mubr.msk.f32.mxu1 %vm5899_vm1, %v5898_v22  ;;  %v2832_v11 = vpop.xlane.xlu0 %2831 }
 0x4a9   :  { %5627 = vmatprep.subr.mxu1 %v5898_v22 }
 0x4b7   :  { %v2814_v14 = vpop.xlane.xlu1 %2813 }
 0x4b8   :  { %5835 = vrcp.f32 %v2814_v14 }
 0x4b9   :  { %5837 = vrcp.f32 %v2820_v55 }
 0x4bb   :  { %v2823_v40 = vpop.xlane.xlu1 %2822 }
 0x4bc   :  { %5839 = vrcp.f32 %v2823_v40 }
 0x4bd   :  { %5841 = vrcp.f32 %v2826_v41 }
 0x4bf   :  { %v2829_v8 = vpop.xlane.xlu1 %2828 }
 0x4c0   :  { %5843 = vrcp.f32 %v2829_v8 }
 0x4c1   :  { %5845 = vrcp.f32 %v2832_v11 }
 0x4c2   :  { %v5836_v33 = vpop.eup %5835 }
 0x4c3   :  { %v2852_v51 = vmul.f32 %v5836_v33, %v6596_v42  ;;  %v5838_v19 = vpop.eup %5837  ;;  %v5775_v16 = vpop.permute.xlu1 %5774 }
 0x4c4   :  { %v2856_v54 = vmul.f32 %v5838_v19, %v6579_v44  ;;  %v5777_v12 = vunpack.i.h.bf16 %v5775_v16  ;;  %v5776_v13 = vunpack.i.l.bf16 %v5775_v16 }
 0x4c5   :  { %5605 = vmatmul.mubr.msk.f32.vlgmr.msra.gmra.mrb[28].mxu0 %vm1496_vm2, %v2852_v51 }
 0x4c6   :  { %v5840_v39 = vpop.eup %5839  ;;  %5613 = vmatpush3.msra.mxu0 %v6452_v7  ;;  %5614 = vmatprep.mubr.msk.f32.mxu0 %vm5899_vm1, %v5898_v22  ;;  %v5711_v62 = vpack.c.bf16 %v5777_v12, %v5776_v13 }
 0x4c7   :  { %v2858_v36 = vmul.f32 %v5840_v39, %v6600_v25  ;;  %5622 = vmatprep.subr.mxu0 %v5898_v22  ;;  %v5842_v29 = vpop.eup %5841  ;;  %v5863_v25 = vld [vmem:[%s6996_s1 + $0x10] sm:$0xff] }
 0x4c8   :  { %v2860_v7 = vmul.f32 %v5842_v29, %v6585_v34 }
 0x4c9   :  { %5615 = vmatmul.mubr.msk.f32.vlgmr.msra.gmra.mrb[30].mxu0 %vm1496_vm2, %v2856_v54  ;;  %5620 = vmatmul.mubr.msk.f32.vlgmr.msra.gmra.mrb[28].mxu1 %vm1496_vm2, %v2858_v36 }
 0x4ca   :  { %v5844_v42 = vpop.eup %5843  ;;  %5623 = vmatpush3.msra.mxu0 %v6650_v37  ;;  %5628 = vmatpush3.msra.mxu1 %v1494_v32 }
 0x4cb   :  { %v2862_v46 = vmul.f32 %v5844_v42, %v6604_v23  ;;  %5624 = vmatprep.mubr.msk.f32.mxu0 %vm5899_vm1, %v5898_v22  ;;  %5629 = vmatprep.mubr.msk.f32.mxu1 %vm5899_vm1, %v5898_v22  ;;  %v5846_v44 = vpop.eup %5845  ;;  %v5864_v23 = vld [vmem:[%s6996_s1 + $0x18] sm:$0xff] }
 0x4cc   :  { %5632 = vmatprep.subr.mxu0 %v5898_v22  ;;  %v2864_v34 = vmul.f32 %v5846_v44, %v6589_v53  ;;  %v5778_v45 = vpack.i.bf16 %v5864_v23, %v5863_v25 }
 0x4cd   :  { %5625 = vmatmul.mubr.msk.f32.vlgmr.msra.gmra.mrb[32].mxu0 %vm1496_vm2, %v2860_v7  ;;  %5630 = vmatmul.mubr.msk.f32.vlgmr.msra.gmra.mrb[30].mxu1 %vm1496_vm2, %v2862_v46 }
 0x4ce   :  { %5633 = vmatpush3.msra.mxu0 %v6657_v18  ;;  %5634 = vmatprep.mubr.msk.f32.mxu0 %vm5899_vm1, %v5898_v22 }
 0x4cf   :  { %5779 = vrot.lane.b32.xlu0 %v5778_v45, %s5890_s16  ;;  %5712 = vmatprep.subr.bf16.mxu0 %v5711_v62 }
 0x4d1   :  { %5635 = vmatmul.mubr.msk.f32.vlgmr.msra.gmra.mrb[34].mxu0 %vm1496_vm2, %v2864_v34 }
 0x4d2   :  { %5714 = vmatpush3.bf16.msra.mxu0 %v5711_v62 }
 0x541   :  { %v5780_v17 = vpop.permute.xlu0 %5779 }
 0x542   :  { %v5782_v10 = vunpack.i.h.bf16 %v5780_v17  ;;  %v5781_v37 = vunpack.i.l.bf16 %v5780_v17 }
 0x544   :  { %v5715_v32 = vpack.c.bf16 %v5782_v10, %v5781_v37 }
 0x546   :  { %5716 = vmatprep.subr.bf16.mxu0 %v5715_v32 }
 0x547   :  { %5718 = vmatpush3.bf16.msra.mxu0 %v5715_v32 }
 0x557   :  { %v3007_v22 = vpop.f32.mrb[20].mxu0 }
 0x558   :  { %v2934_v53 = vpop.f32.mrb[16].mxu1  ;;  %v5566_v47 = vpop.f32.mrb[21].mxu0 }
 0x559   :  { %v5561_v28 = vpop.f32.mrb[17].mxu1 }
 0x55c   :  { %v3080_v38 = vpop.f32.mrb[18].mxu1 }
 0x55d   :  { %v4033_v5 = vcombine.low %v2934_v53, %v3080_v38  ;;  %v4034_v24 = vcombine.high %v2934_v53, %v3080_v38  ;;  %v5571_v35 = vpop.f32.mrb[19].mxu1 }
 0x55f   :  { %v3153_v52 = vpop.f32.mrb[22].mxu0  ;;  %v4041_v20 = vrot.slane %v4033_v5, %v5958_v21  ;;  %v4048_v1 = vrot.slane %v4034_v24, %v5958_v21 }
 0x560   :  { %v4049_v49 = vcombine.low %v3007_v22, %v3153_v52  ;;  %v4050_v31 = vcombine.high %v3007_v22, %v3153_v52  ;;  %v5576_v6 = vpop.f32.mrb[23].mxu0 }
 0x562   :  { %v4057_v2 = vrot.slane %v4049_v49, %v5958_v21  ;;  %v4064_v4 = vrot.slane %v4050_v31, %v5958_v21 }
 0x564   :  { %v4065_v3 = vcombine.low %v4041_v20, %v4057_v2  ;;  %v4066_v30 = vcombine.high %v4041_v20, %v4057_v2  ;;  %v4081_v63 = vcombine.low %v4048_v1, %v4064_v4  ;;  %v4082_v50 = vcombine.high %v4048_v1, %v4064_v4 }
 0x566   :  { %v4073_v18 = vrot.slane %v4065_v3, %v5961_v27  ;;  %v4080_v15 = vrot.slane %v4066_v30, %v5961_v27  ;;  %v4089_v0 = vrot.slane %v4081_v63, %v5961_v27  ;;  %v4096_v26 = vrot.slane %v4082_v50, %v5961_v27 }
 0x568   :  { %v4305_v48 = vcombine.low %v4073_v18, %v4080_v15  ;;  %v5337_v61 = vcombine.high %v4073_v18, %v4080_v15  ;;  %v4321_v43 = vcombine.low %v4089_v0, %v4096_v26  ;;  %v5338_v55 = vcombine.high %v4089_v0, %v4096_v26 }
 0x56a   :  { %v4312_v14 = vrot.slane %v4305_v48, %v5958_v21  ;;  %v4320_v41 = vrot.slane %v5337_v61, %v5958_v21  ;;  %v4328_v40 = vrot.slane %v4321_v43, %v5958_v21  ;;  %v4336_v11 = vrot.slane %v5338_v55, %v5958_v21 }
 0x56c   :  { %v4338_v8 = vcombine.high %v4312_v14, %v4320_v41  ;;  %v4354_v33 = vcombine.high %v4328_v40, %v4336_v11  ;;  %v4337_v51 = vcombine.low %v4312_v14, %v4320_v41  ;;  %v4353_v19 = vcombine.low %v4328_v40, %v4336_v11 }
 0x56d   :  { %v3226_v39 = vpop.f32.mrb[20].mxu1  ;;  %v3299_v54 = vpop.f32.mrb[24].mxu0 }
 0x56e   :  { %v4352_v36 = vrot.slane %v4338_v8, %v5961_v27  ;;  %v4368_v29 = vrot.slane %v4354_v33, %v5961_v27  ;;  %v6738_v42 = vrot.slane %v4337_v51, %v5961_v27  ;;  %v6741_v7 = vrot.slane %v4353_v19, %v5961_v27  ;;  %v5581_v46 = vpop.f32.mrb[21].mxu1  ;;  %v5586_v44 = vpop.f32.mrb[25].mxu0 }
 0x570   :  { %v4371_v34 = vcombine.low %v4352_v36, %v4368_v29  ;;  %v4370_v25 = vcombine.high %v6738_v42, %v6741_v7  ;;  %v4372_v23 = vcombine.high %v4352_v36, %v4368_v29  ;;  %v4369_v45 = vcombine.low %v6738_v42, %v6741_v7 }
 0x572   :  { %4597 = vrot.lane.b32.xlu0 %v4371_v34, %s5900_s6  ;;  %4581 = vrot.lane.b32.xlu1 %v4370_v25, %s5901_s7  ;;  %v3372_v16 = vpop.f32.mrb[22].mxu1  ;;  %v3445_v12 = vpop.f32.mrb[26].mxu0 }
 0x573   :  { %v4101_v13 = vcombine.low %v3226_v39, %v3372_v16  ;;  %v4102_v62 = vcombine.high %v3226_v39, %v3372_v16  ;;  %v4117_v22 = vcombine.low %v3299_v54, %v3445_v12  ;;  %v4118_v53 = vcombine.high %v3299_v54, %v3445_v12  ;;  %v5591_v47 = vpop.f32.mrb[23].mxu1  ;;  %v5596_v28 = vpop.f32.mrb[27].mxu0 }
 0x575   :  { %v4109_v38 = vrot.slane %v4101_v13, %v5958_v21  ;;  %v4116_v5 = vrot.slane %v4102_v62, %v5958_v21  ;;  %v4125_v24 = vrot.slane %v4117_v22, %v5958_v21  ;;  %v4132_v35 = vrot.slane %v4118_v53, %v5958_v21 }
 0x576   :  { %4613 = vrot.lane.b32.xlu0 %v4372_v23, %s5902_s8  ;;  %v3518_v52 = vpop.f32.mrb[24].mxu1 }
 0x577   :  { %v4133_v49 = vcombine.low %v4109_v38, %v4125_v24  ;;  %v4134_v31 = vcombine.high %v4109_v38, %v4125_v24  ;;  %v4149_v6 = vcombine.low %v4116_v5, %v4132_v35  ;;  %v4150_v20 = vcombine.high %v4116_v5, %v4132_v35  ;;  %v5601_v1 = vpop.f32.mrb[25].mxu1 }
 0x579   :  { %v4141_v2 = vrot.slane %v4133_v49, %v5961_v27  ;;  %v4148_v4 = vrot.slane %v4134_v31, %v5961_v27  ;;  %v4157_v17 = vrot.slane %v4149_v6, %v5961_v27  ;;  %v4164_v10 = vrot.slane %v4150_v20, %v5961_v27 }
 0x57a   :  { %v3664_v37 = vpop.f32.mrb[26].mxu1 }
 0x57b   :  { %v4373_v3 = vcombine.low %v4141_v2, %v4148_v4  ;;  %v5339_v30 = vcombine.high %v4141_v2, %v4148_v4  ;;  %v4389_v63 = vcombine.low %v4157_v17, %v4164_v10  ;;  %v5340_v50 = vcombine.high %v4157_v17, %v4164_v10  ;;  %v5611_v32 = vpop.f32.mrb[27].mxu1 }
 0x57c   :  { %v4169_v18 = vcombine.low %v3518_v52, %v3664_v37  ;;  %v4170_v15 = vcombine.high %v3518_v52, %v3664_v37 }
 0x57d   :  { %v4380_v0 = vrot.slane %v4373_v3, %v5958_v21  ;;  %v4388_v26 = vrot.slane %v5339_v30, %v5958_v21  ;;  %v4396_v48 = vrot.slane %v4389_v63, %v5958_v21  ;;  %v4404_v61 = vrot.slane %v5340_v50, %v5958_v21 }
 0x57e   :  { %v4177_v12 = vrot.slane %v4169_v18, %v5958_v21  ;;  %v4184_v13 = vrot.slane %v4170_v15, %v5958_v21 }
 0x57f   :  { %v4405_v43 = vcombine.low %v4380_v0, %v4388_v26  ;;  %v4421_v55 = vcombine.low %v4396_v48, %v4404_v61  ;;  %v4406_v14 = vcombine.high %v4380_v0, %v4388_v26  ;;  %v4422_v41 = vcombine.high %v4396_v48, %v4404_v61 }
 0x581   :  { %v6763_v40 = vrot.slane %v4405_v43, %v5961_v27  ;;  %v6766_v11 = vrot.slane %v4421_v55, %v5961_v27  ;;  %v4420_v8 = vrot.slane %v4406_v14, %v5961_v27  ;;  %v4436_v33 = vrot.slane %v4422_v41, %v5961_v27 }
 0x583   :  { %v4438_v51 = vcombine.high %v6763_v40, %v6766_v11  ;;  %v4439_v19 = vcombine.low %v4420_v8, %v4436_v33  ;;  %v4440_v39 = vcombine.high %v4420_v8, %v4436_v33  ;;  %v4437_v54 = vcombine.low %v6763_v40, %v6766_v11 }
 0x585   :  { %4583 = vrot.lane.b32.xlu1 %v4438_v51, %s5901_s7 }
 0x589   :  { %4599 = vrot.lane.b32.xlu1 %v4439_v19, %s5900_s6 }
 0x58d   :  { %4615 = vrot.lane.b32.xlu1 %v4440_v39, %s5902_s8 }
 0x598   :  { %v3591_v36 = vpop.f32.mrb[28].mxu0 }
 0x599   :  { %v5606_v29 = vpop.f32.mrb[29].mxu0 }
 0x59c   :  { %v3737_v46 = vpop.f32.mrb[30].mxu0  ;;  %v3810_v44 = vpop.f32.mrb[28].mxu1 }
 0x59d   :  { %v4185_v34 = vcombine.low %v3591_v36, %v3737_v46  ;;  %v4186_v25 = vcombine.high %v3591_v36, %v3737_v46  ;;  %v5616_v23 = vpop.f32.mrb[31].mxu0  ;;  %v5621_v16 = vpop.f32.mrb[29].mxu1 }
 0x59f   :  { %v4193_v62 = vrot.slane %v4185_v34, %v5958_v21  ;;  %v4200_v22 = vrot.slane %v4186_v25, %v5958_v21 }
 0x5a0   :  { %v3883_v53 = vpop.f32.mrb[32].mxu0  ;;  %v3956_v47 = vpop.f32.mrb[30].mxu1 }
 0x5a1   :  { %v4201_v28 = vcombine.low %v4177_v12, %v4193_v62  ;;  %v4202_v38 = vcombine.high %v4177_v12, %v4193_v62  ;;  %v4217_v5 = vcombine.low %v4184_v13, %v4200_v22  ;;  %v4218_v24 = vcombine.high %v4184_v13, %v4200_v22  ;;  %v5626_v35 = vpop.f32.mrb[33].mxu0  ;;  %v5631_v52 = vpop.f32.mrb[31].mxu1 }
 0x5a2   :  { %v4237_v49 = vcombine.low %v3810_v44, %v3956_v47  ;;  %v4238_v31 = vcombine.high %v3810_v44, %v3956_v47 }
 0x5a3   :  { %v4209_v6 = vrot.slane %v4201_v28, %v5961_v27  ;;  %v4216_v20 = vrot.slane %v4202_v38, %v5961_v27  ;;  %v4225_v1 = vrot.slane %v4217_v5, %v5961_v27  ;;  %v4232_v2 = vrot.slane %v4218_v24, %v5961_v27 }
 0x5a4   :  { %v4029_v4 = vpop.f32.mrb[34].mxu0  ;;  %v4245_v26 = vrot.slane %v4237_v49, %v5958_v21  ;;  %v4252_v48 = vrot.slane %v4238_v31, %v5958_v21 }
 0x5a5   :  { %v4441_v17 = vcombine.low %v4209_v6, %v4216_v20  ;;  %v5341_v10 = vcombine.high %v4209_v6, %v4216_v20  ;;  %v4457_v37 = vcombine.low %v4225_v1, %v4232_v2  ;;  %v5342_v3 = vcombine.high %v4225_v1, %v4232_v2  ;;  %v5636_v30 = vpop.f32.mrb[35].mxu0 }
 0x5a6   :  { %v4253_v63 = vcombine.low %v3883_v53, %v4029_v4  ;;  %v4254_v50 = vcombine.high %v3883_v53, %v4029_v4 }
 0x5a7   :  { %v4448_v32 = vrot.slane %v4441_v17, %v5958_v21  ;;  %v4456_v18 = vrot.slane %v5341_v10, %v5958_v21  ;;  %v4464_v15 = vrot.slane %v4457_v37, %v5958_v21  ;;  %v4472_v0 = vrot.slane %v5342_v3, %v5958_v21 }
 0x5a8   :  { %v4261_v61 = vrot.slane %v4253_v63, %v5958_v21  ;;  %v4268_v43 = vrot.slane %v4254_v50, %v5958_v21 }
 0x5a9   :  { %v4473_v55 = vcombine.low %v4448_v32, %v4456_v18  ;;  %v4489_v14 = vcombine.low %v4464_v15, %v4472_v0  ;;  %v4474_v41 = vcombine.high %v4448_v32, %v4456_v18  ;;  %v4490_v8 = vcombine.high %v4464_v15, %v4472_v0 }
 0x5aa   :  { %v4269_v33 = vcombine.low %v4245_v26, %v4261_v61  ;;  %v4270_v51 = vcombine.high %v4245_v26, %v4261_v61  ;;  %v4285_v19 = vcombine.low %v4252_v48, %v4268_v43  ;;  %v4286_v39 = vcombine.high %v4252_v48, %v4268_v43 }
 0x5ab   :  { %v4481_v36 = vrot.slane %v4473_v55, %v5961_v27  ;;  %v4497_v29 = vrot.slane %v4489_v14, %v5961_v27  ;;  %v4488_v46 = vrot.slane %v4474_v41, %v5961_v27  ;;  %v4504_v44 = vrot.slane %v4490_v8, %v5961_v27 }
 0x5ac   :  { %v4277_v34 = vrot.slane %v4269_v33, %v5961_v27  ;;  %v4284_v25 = vrot.slane %v4270_v51, %v5961_v27  ;;  %v4293_v23 = vrot.slane %v4285_v19, %v5961_v27  ;;  %v4300_v16 = vrot.slane %v4286_v39, %v5961_v27 }
 0x5ad   :  { %v4506_v12 = vcombine.high %v4481_v36, %v4497_v29  ;;  %v4507_v13 = vcombine.low %v4488_v46, %v4504_v44  ;;  %v4508_v62 = vcombine.high %v4488_v46, %v4504_v44  ;;  %v4505_v22 = vcombine.low %v4481_v36, %v4497_v29  ;;  %v6841_v29 = vld [vmem:[%s6996_s1 + $0x40] sm:$0xff] }
 0x5ae   :  { %v4509_v53 = vcombine.low %v4277_v34, %v4284_v25  ;;  %v5343_v47 = vcombine.high %v4277_v34, %v4284_v25  ;;  %v4525_v28 = vcombine.low %v4293_v23, %v4300_v16  ;;  %v5344_v38 = vcombine.high %v4293_v23, %v4300_v16 }
 0x5af   :  { %4585 = vrot.lane.b32.xlu0 %v4506_v12, %s5901_s7  ;;  %v4758_v36 = vsub.s32 2, %v5950_v9 }
 0x5b0   :  { %v4516_v5 = vrot.slane %v4509_v53, %v5958_v21  ;;  %v4524_v24 = vrot.slane %v5343_v47, %v5958_v21  ;;  %v4532_v35 = vrot.slane %v4525_v28, %v5958_v21  ;;  %v4540_v52 = vrot.slane %v5344_v38, %v5958_v21 }
 0x5b1   :  { %v4759_v46 = vrot.slane %v6841_v29, %v4758_v36  ;;  %v35_v36 = vld [vmem:[%s6997_s2 + $0x50] sm:$0xff] }
 0x5b2   :  { %v4541_v49 = vcombine.low %v4516_v5, %v4524_v24  ;;  %v4557_v31 = vcombine.low %v4532_v35, %v4540_v52  ;;  %v4542_v6 = vcombine.high %v4516_v5, %v4524_v24  ;;  %v4558_v20 = vcombine.high %v4532_v35, %v4540_v52 }
 0x5b3   :  { %4601 = vrot.lane.b32.xlu0 %v4507_v13, %s5900_s6 }
 0x5b4   :  { %v4549_v1 = vrot.slane %v4541_v49, %v5961_v27  ;;  %v4565_v2 = vrot.slane %v4557_v31, %v5961_v27  ;;  %v4556_v4 = vrot.slane %v4542_v6, %v5961_v27  ;;  %v4572_v17 = vrot.slane %v4558_v20, %v5961_v27 }
 0x5b6   :  { %v4574_v10 = vcombine.high %v4549_v1, %v4565_v2  ;;  %v4575_v37 = vcombine.low %v4556_v4, %v4572_v17  ;;  %v4576_v3 = vcombine.high %v4556_v4, %v4572_v17  ;;  %v4573_v30 = vcombine.low %v4549_v1, %v4565_v2  ;;  %v19_v2 = vld [vmem:[%s6996_s1 + $0x20] sm:$0xff]  ;;  %v20_v4 = vld [vmem:[%s6996_s1 + $0x28] sm:$0xff]  ;;  %v21_v17 = vld [vmem:[%s6996_s1 + $0x30] sm:$0xff] }
 0x5b7   :  { %4617 = vrot.lane.b32.xlu0 %v4508_v62, %s5902_s8 }
 0x5b8   :  { %4587 = vrot.lane.b32.xlu1 %v4574_v10, %s5901_s7  ;;  %v5719_v10 = vpack.c.bf16 %v20_v4, %v19_v2 }
 0x5ba   :  { %5720 = vmatprep.subr.bf16.mxu0 %v5719_v10 }
 0x5bc   :  { %4603 = vrot.lane.b32.xlu1 %v4575_v37, %s5900_s6  ;;  %v22_v37 = vld [vmem:[%s6996_s1 + $0x38] sm:$0xff] }
 0x5c0   :  { %4619 = vrot.lane.b32.xlu1 %v4576_v3, %s5902_s8  ;;  %v5723_v3 = vpack.c.bf16 %v22_v37, %v21_v17 }
 0x5e4   :  { %v4582_v63 = vpop.permute.xlu1 %4581  ;;  %v4598_v50 = vpop.permute.xlu0 %4597 }
 0x5e5   :  { %v4625_v32 = vsel %vm1496_vm2, %v4369_v45, %v4582_v63 }
 0x5e6   :  { %v4630_v18 = vsel %vm4629_vm3, %v4625_v32, %v4598_v50 }
 0x5e8   :  { %v4614_v15 = vpop.permute.xlu0 %4613 }
 0x5e9   :  { %v4635_v0 = vsel %vm4634_vm4, %v4630_v18, %v4614_v15 }
 0x5ea   :  { %5645 = vmatprep.mubr.msk.f32.mxu0 %vm188_vm0, %v4635_v0 }
 0x5f7   :  { %v4584_v26 = vpop.permute.xlu1 %4583 }
 0x5f8   :  { %v4626_v61 = vsel %vm1496_vm2, %v4437_v54, %v4584_v26 }
 0x5fb   :  { %v4600_v48 = vpop.permute.xlu1 %4599 }
 0x5fc   :  { %v4631_v42 = vsel %vm4629_vm3, %v4626_v61, %v4600_v48 }
 0x5ff   :  { %v4616_v7 = vpop.permute.xlu1 %4615 }
 0x600   :  { %v4636_v45 = vsel %vm4634_vm4, %v4631_v42, %v4616_v7  ;;  %v25_v42 = vld [vmem:[%s6997_s2] sm:$0xff]  ;;  %v26_v7 = vld [vmem:[%s6997_s2 + $0x8] sm:$0xff] }
 0x601   :  { %5646 = vmatmul.mubr.msk.f32.vlgmr.msra.gmra.mrb[36].mxu0 %vm188_vm0, %v4636_v45  ;;  %v27_v45 = vld [vmem:[%s6997_s2 + $0x10] sm:$0xff] }
 0x602   :  { %5722 = vmatpush3.bf16.msra.mxu0 %v5719_v10 }
 0x603   :  { %5724 = vmatprep.subr.bf16.mxu0 %v5723_v3 }
 0x606   :  { %5726 = vmatpush3.bf16.msra.mxu0 %v5723_v3 }
 0x621   :  { %v4586_v43 = vpop.permute.xlu0 %4585 }
 0x622   :  { %v4627_v14 = vsel %vm1496_vm2, %v4505_v22, %v4586_v43  ;;  %v5727_v43 = vpack.c.bf16 %v26_v7, %v25_v42 }
 0x624   :  { %5728 = vmatprep.subr.bf16.mxu1 %v5727_v43 }
 0x625   :  { %v4602_v55 = vpop.permute.xlu0 %4601  ;;  %5730 = vmatpush3.bf16.msra.mxu1 %v5727_v43 }
 0x626   :  { %v4632_v41 = vsel %vm4629_vm3, %v4627_v14, %v4602_v55  ;;  %v28_v55 = vld [vmem:[%s6997_s2 + $0x18] sm:$0xff] }
 0x627   :  { %v5731_v14 = vpack.c.bf16 %v28_v55, %v27_v45 }
 0x629   :  { %v4618_v8 = vpop.permute.xlu0 %4617  ;;  %5732 = vmatprep.subr.bf16.mxu1 %v5731_v14 }
 0x62a   :  { %v4588_v33 = vpop.permute.xlu1 %4587  ;;  %v4637_v51 = vsel %vm4634_vm4, %v4632_v41, %v4618_v8  ;;  %v29_v41 = vld [vmem:[%s6997_s2 + $0x20] sm:$0xff]  ;;  %v30_v8 = vld [vmem:[%s6997_s2 + $0x28] sm:$0xff]  ;;  %5734 = vmatpush3.bf16.msra.mxu1 %v5731_v14 }
 0x62b   :  { %5648 = vmatprep.mubr.msk.f32.mxu0 %vm188_vm0, %v4637_v51  ;;  %v4628_v11 = vsel %vm1496_vm2, %v4573_v30, %v4588_v33  ;;  %v5735_v33 = vpack.c.bf16 %v30_v8, %v29_v41  ;;  %v31_v51 = vld [vmem:[%s6997_s2 + $0x30] sm:$0xff] }
 0x62d   :  { %5736 = vmatprep.subr.bf16.mxu1 %v5735_v33 }
 0x62e   :  { %v4604_v40 = vpop.permute.xlu1 %4603  ;;  %5738 = vmatpush3.bf16.msra.mxu1 %v5735_v33 }
 0x62f   :  { %v4633_v54 = vsel %vm4629_vm3, %v4628_v11, %v4604_v40  ;;  %v32_v40 = vld [vmem:[%s6997_s2 + $0x38] sm:$0xff] }
 0x630   :  { %v5739_v11 = vpack.c.bf16 %v32_v40, %v31_v51 }
 0x632   :  { %v4620_v19 = vpop.permute.xlu1 %4619  ;;  %5740 = vmatprep.subr.bf16.mxu1 %v5739_v11 }
 0x633   :  { %v4638_v39 = vsel %vm4634_vm4, %v4633_v54, %v4620_v19  ;;  %v33_v54 = vld [vmem:[%s6997_s2 + $0x40] sm:$0xff]  ;;  %v34_v19 = vld [vmem:[%s6997_s2 + $0x48] sm:$0xff]  ;;  %5742 = vmatpush3.bf16.msra.mxu1 %v5739_v11  ;;  %v4940_v11 = vsub.s32 4, %v5950_v9 }
 0x634   :  { %5649 = vmatmul.mubr.msk.f32.gmra.mrb[38].mxu0 %vm188_vm0, %v4638_v39  ;;  %v5743_v39 = vpack.c.bf16 %v34_v19, %v33_v54 }
 0x635   :  { %v4941_v54 = vrot.slane %v6841_v29, %v4940_v11 }
 0x636   :  { %5744 = vmatprep.subr.bf16.mxu1 %v5743_v39 }
 0x637   :  { %5746 = vmatpush3.bf16.msra.mxu1 %v5743_v39 }
 0x6d4   :  { %v5647_v44 = vpop.f32.mrb[36].mxu0 }
 0x6d5   :  { %v4753_v34 = vadd.f32 %v5647_v44, %v5981_v57  ;;  %v4733_v25 = vpop.f32.mrb[37].mxu0 }
 0x6d6   :  { %v4752_v23 = vadd.f32 %v4733_v25, %v5979_v56  ;;  %v38_v25 = vld [vmem:[%s6997_s2 + $0x68] sm:$0xff] }
 0x6d7   :  { %v4761_v16 = vadd.f32 %v4759_v46, %v4753_v34  ;;  %v37_v34 = vld [vmem:[%s6997_s2 + $0x60] sm:$0xff] }
 0x6d8   :  { %v4760_v12 = vadd.f32 %v4759_v46, %v4752_v23  ;;  %v5751_v23 = vpack.c.bf16 %v38_v25, %v37_v34 }
 0x6d9   :  { %v4767_v13 = vsel %vm188_vm0, %v4761_v16, 0.0 }
 0x6da   :  { %4768 = vadd.xlane.f32.xlu1 %v4767_v13  ;;  %v4764_v62 = vsel %vm188_vm0, %v4760_v12, 0.0 }
 0x6db   :  { %4765 = vadd.xlane.f32.xlu0 %v4764_v62 }
 0x707   :  { %v5650_v22 = vpop.f32.mrb[38].mxu0 }
 0x708   :  { %v4743_v53 = vpop.f32.mrb[39].mxu0  ;;  %v4755_v47 = vadd.f32 %v5650_v22, %v5991_v59 }
 0x709   :  { %v4754_v28 = vadd.f32 %v4743_v53, %v5985_v58 }
 0x70a   :  { %v4763_v5 = vadd.f32 %v4759_v46, %v4755_v47  ;;  %v4819_v47 = vsub.s32 5, %v5950_v9 }
 0x70b   :  { %v4762_v38 = vadd.f32 %v4759_v46, %v4754_v28  ;;  %v36_v46 = vld [vmem:[%s6997_s2 + $0x58] sm:$0xff]  ;;  %v4827_v28 = vsub.s32 6, %v5950_v9 }
 0x70c   :  { %v4773_v56 = vsel %vm188_vm0, %v4763_v5, 0.0  ;;  %v5747_v44 = vpack.c.bf16 %v36_v46, %v35_v36 }
 0x70d   :  { %v4770_v57 = vsel %vm188_vm0, %v4762_v38, 0.0 }
 0x70e   :  { %4771 = vadd.xlane.f32.xlu0 %v4770_v57  ;;  %5748 = vmatprep.subr.bf16.mxu1 %v5747_v44 }
 0x70f   :  { %5750 = vmatpush3.bf16.msra.mxu1 %v5747_v44 }
 0x710   :  { %5752 = vmatprep.subr.bf16.mxu1 %v5751_v23 }
 0x712   :  { %4774 = vadd.xlane.f32.xlu0 %v4773_v56 }
 0x713   :  { %5754 = vmatpush3.bf16.msra.mxu1 %v5751_v23 }
 0x767   :  { %v4769_v24 = vpop.xlane.xlu1 %4768 }
 0x768   :  { %v4778_v35 = vmul.f32 0.03125, %v4769_v24  ;;  %v4766_v52 = vpop.xlane.xlu0 %4765 }
 0x769   :  { %v4777_v49 = vmul.f32 0.03125, %v4766_v52 }
 0x76a   :  { %v6852_v31 = vsub.f32 %v4761_v16, %v4778_v35  ;;  %v4828_v35 = vrot.slane %v6841_v29, %v4827_v28 }
 0x76b   :  { %v6854_v6 = vsub.f32 %v4760_v12, %v4777_v49 }
 0x76c   :  { %v4786_v59 = vmul.f32 %v6852_v31, %v6852_v31 }
 0x76d   :  { %v4785_v58 = vmul.f32 %v6854_v6, %v6854_v6 }
 0x76e   :  { %v4792_v20 = vsel %vm188_vm0, %v4786_v59, 0.0 }
 0x76f   :  { %4793 = vadd.xlane.f32.xlu0 %v4792_v20  ;;  %v4789_v1 = vsel %vm188_vm0, %v4785_v58, 0.0 }
 0x770   :  { %4790 = vadd.xlane.f32.xlu1 %v4789_v1 }
 0x79b   :  { %v4772_v30 = vpop.xlane.xlu0 %4771 }
 0x79c   :  { %v4779_v63 = vmul.f32 0.03125, %v4772_v30 }
 0x79e   :  { %v6874_v50 = vsub.f32 %v4762_v38, %v4779_v63  ;;  %v4820_v38 = vrot.slane %v6841_v29, %v4819_v47 }
 0x79f   :  { %v4775_v32 = vpop.xlane.xlu0 %4774 }
 0x7a0   :  { %v4780_v18 = vmul.f32 0.03125, %v4775_v32  ;;  %v4787_v15 = vmul.f32 %v6874_v50, %v6874_v50 }
 0x7a2   :  { %v6878_v0 = vsub.f32 %v4763_v5, %v4780_v18  ;;  %v4795_v26 = vsel %vm188_vm0, %v4787_v15, 0.0  ;;  %v39_v15 = vld [vmem:[%s6997_s2 + $0x70] sm:$0xff] }
 0x7a3   :  { %4796 = vadd.xlane.f32.xlu1 %v4795_v26  ;;  %v40_v26 = vld [vmem:[%s6997_s2 + $0x78] sm:$0xff] }
 0x7a4   :  { %v4788_v48 = vmul.f32 %v6878_v0, %v6878_v0 }
 0x7a6   :  { %v4798_v61 = vsel %vm188_vm0, %v4788_v48, 0.0  ;;  %v4835_v48 = vsub.s32 3, %v5950_v9 }
 0x7a7   :  { %4799 = vadd.xlane.f32.xlu0 %v4798_v61 }
 0x7fc   :  { %v4794_v16 = vpop.xlane.xlu0 %4793 }
 0x7fd   :  { %v4802_v12 = vmul.f32 0.03125, %v4794_v16  ;;  %v4791_v13 = vpop.xlane.xlu1 %4790 }
 0x7fe   :  { %v4801_v62 = vmul.f32 0.03125, %v4791_v13 }
 0x7ff   :  { %v4806_v22 = vadd.f32 1e-05, %v4802_v12 }
 0x800   :  { %v4805_v53 = vadd.f32 1e-05, %v4801_v62 }
 0x801   :  { %5847 = vrsqrt.f32 %v4806_v22 }
 0x802   :  { %5849 = vrsqrt.f32 %v4805_v53 }
 0x80b   :  { %v5848_v57 = vpop.eup %5847 }
 0x80c   :  { %v5850_v5 = vpop.eup %5849  ;;  %v4814_v56 = vmul.f32 %v5848_v57, %v6852_v31 }
 0x80d   :  { %v4813_v24 = vmul.f32 %v5850_v5, %v6854_v6 }
 0x80e   :  { %v4822_v52 = vmul.f32 %v4820_v38, %v4814_v56 }
 0x80f   :  { %v4821_v49 = vmul.f32 %v4820_v38, %v4813_v24 }
 0x810   :  { %v4830_v58 = vadd.f32 %v4828_v35, %v4822_v52 }
 0x811   :  { %v4829_v59 = vadd.f32 %v4828_v35, %v4821_v49 }
 0x813   :  { %5659 = vmatprep.mubr.msk.f32.mxu0 %vm188_vm0, %v4829_v59 }
 0x814   :  { %5660 = vmatmul.mubr.msk.f32.vlgmr.msra.gmra.mrb[40].mxu0 %vm188_vm0, %v4830_v58 }
 0x830   :  { %v4797_v20 = vpop.xlane.xlu1 %4796 }
 0x831   :  { %v4803_v1 = vmul.f32 0.03125, %v4797_v20 }
 0x833   :  { %v4807_v2 = vadd.f32 1e-05, %v4803_v1 }
 0x834   :  { %v4800_v4 = vpop.xlane.xlu0 %4799 }
 0x835   :  { %5851 = vrsqrt.f32 %v4807_v2  ;;  %v4804_v17 = vmul.f32 0.03125, %v4800_v4 }
 0x837   :  { %v4808_v10 = vadd.f32 1e-05, %v4804_v17 }
 0x839   :  { %5853 = vrsqrt.f32 %v4808_v10 }
 0x83f   :  { %v5852_v31 = vpop.eup %5851 }
 0x840   :  { %v4815_v6 = vmul.f32 %v5852_v31, %v6874_v50  ;;  %v5755_v50 = vpack.c.bf16 %v40_v26, %v39_v15 }
 0x842   :  { %v4823_v37 = vmul.f32 %v4820_v38, %v4815_v6  ;;  %5756 = vmatprep.subr.bf16.mxu1 %v5755_v50 }
 0x843   :  { %v5854_v3 = vpop.eup %5853  ;;  %5758 = vmatpush3.bf16.msra.mxu1 %v5755_v50 }
 0x844   :  { %v4831_v30 = vadd.f32 %v4828_v35, %v4823_v37  ;;  %v4816_v63 = vmul.f32 %v5854_v3, %v6878_v0  ;;  %v4836_v0 = vrot.slane %v6841_v29, %v4835_v48 }
 0x846   :  { %5662 = vmatprep.mubr.msk.f32.mxu0 %vm188_vm0, %v4831_v30  ;;  %v4824_v32 = vmul.f32 %v4820_v38, %v4816_v63 }
 0x848   :  { %v4832_v18 = vadd.f32 %v4828_v35, %v4824_v32 }
 0x84a   :  { %5663 = vmatmul.mubr.msk.f32.gmra.mrb[42].mxu0 %vm188_vm0, %v4832_v18 }
 0x8e7   :  { %v5661_v61 = vpop.f32.mrb[40].mxu0 }
 0x8e8   :  { %v4921_v42 = vadd.f32 %v5661_v61, %v4836_v0  ;;  %v4915_v7 = vpop.f32.mrb[41].mxu0 }
 0x8e9   :  { %v4916_v45 = vadd.f32 %v4915_v7, %v4836_v0 }
 0x8ea   :  { %v4935_v55 = vmax.f32 %v4921_v42, 0.0 }
 0x8eb   :  { %v4934_v43 = vmax.f32 %v4916_v45, 0.0  ;;  %v5085_v45 = vsub.s32 7, %v5950_v9 }
 0x8ed   :  { %5697 = vmatprep.mubr.f32.mxu1 %v4934_v43 }
 0x8ee   :  { %5698 = vmatmul.mubr.f32.vlgmr.msra.gmra.mrb[32].mxu1 %v4935_v55 }
 0x91d   :  { %v5664_v14 = vpop.f32.mrb[42].mxu0 }
 0x91e   :  { %v4931_v41 = vadd.f32 %v5664_v14, %v4836_v0  ;;  %v4925_v8 = vpop.f32.mrb[43].mxu0  ;;  %v5086_v14 = vrot.slane %v6841_v29, %v5085_v45 }
 0x91f   :  { %v4926_v33 = vadd.f32 %v4925_v8, %v4836_v0  ;;  %v24_v8 = vld [vmem:[%s6996_s1 + $0x48] sm:$0xff]  ;;  %s5903_s1 = smov [#allocation2]  }
 0x920   :  { %v4937_v40 = vmax.f32 %v4931_v41, 0.0  ;;  %v5094_v11 = vrot.slane %v24_v8, %v288_v60  ;;  %s5259_s29 = sshll.u32 %s5903_s1, 4  ;;  %s5260_s29 = int_to_ptr.vmem [resolvable:$true] %s5259_s29 }
 0x921   :  { %v4936_v51 = vmax.f32 %v4926_v33, 0.0  ;;  %s5866_s30 = scalar_lea.vmem %s5260_s29, 128  ;;  %p5871_p1 = scmp.lt.s32.totalorder %s5260_s29, %s5260_s29 }
 0x922   :  { %p5867_p0 = scmp.ne.s32.totalorder %s5260_s29, %s5866_s30  ;;  %p5872_p2 = scmp.lt.s32.totalorder %s5866_s30, %s5866_s30 }
 0x923   :  { %5700 = vmatprep.mubr.f32.mxu1 %v4936_v51 }
 0x924   :  { %5701 = vmatmul.mubr.f32.gmra.mrb[34].mxu1 %v4937_v40  ;;  %p5873_p3 = por %p5872_p2, %p5871_p1 }
 0x926   :  { %p5874_p4 = pnand %p5873_p3, %p5867_p0 }
 0x9c1   :  { %v5699_v19 = vpop.f32.mrb[32].mxu1 }
 0x9c2   :  { %v5014_v39 = vadd.f32 %v5699_v19, %v4941_v54  ;;  %v5008_v36 = vpop.f32.mrb[33].mxu1 }
 0x9c3   :  { %v5009_v46 = vadd.f32 %v5008_v36, %v4941_v54 }
 0x9c4   :  { %v5028_v44 = vadd.f32 %v5014_v39, %v4830_v58 }
 0x9c5   :  { %v5027_v34 = vadd.f32 %v5009_v46, %v4829_v59 }
 0x9c6   :  { %v5034_v25 = vsel %vm188_vm0, %v5028_v44, 0.0 }
 0x9c7   :  { %5035 = vadd.xlane.f32.xlu0 %v5034_v25  ;;  %v5031_v23 = vsel %vm188_vm0, %v5027_v34, 0.0 }
 0x9c8   :  { %5032 = vadd.xlane.f32.xlu1 %v5031_v23 }
 0x9f7   :  { %v5702_v16 = vpop.f32.mrb[34].mxu1 }
 0x9f8   :  { %v5024_v12 = vadd.f32 %v5702_v16, %v4941_v54  ;;  %v5018_v13 = vpop.f32.mrb[35].mxu1 }
 0x9f9   :  { %v5019_v62 = vadd.f32 %v5018_v13, %v4941_v54 }
 0x9fa   :  { %v5030_v22 = vadd.f32 %v5024_v12, %v4832_v18 }
 0x9fb   :  { %v5029_v53 = vadd.f32 %v5019_v62, %v4831_v30 }
 0x9fc   :  { %v5040_v47 = vsel %vm188_vm0, %v5030_v22, 0.0 }
 0x9fd   :  { %5041 = vadd.xlane.f32.xlu0 %v5040_v47  ;;  %v5037_v28 = vsel %vm188_vm0, %v5029_v53, 0.0 }
 0x9fe   :  { %5038 = vadd.xlane.f32.xlu1 %v5037_v28 }
 0xa54   :  { %v5036_v38 = vpop.xlane.xlu0 %5035 }
 0xa55   :  { %v5044_v57 = vmul.f32 0.03125, %v5036_v38  ;;  %v5033_v5 = vpop.xlane.xlu1 %5032 }
 0xa56   :  { %v5043_v56 = vmul.f32 0.03125, %v5033_v5 }
 0xa57   :  { %v5048_v24 = vsub.f32 %v5028_v44, %v5044_v57 }
 0xa58   :  { %v5047_v35 = vsub.f32 %v5027_v34, %v5043_v56 }
 0xa59   :  { %v5052_v52 = vmul.f32 %v5048_v24, %v5048_v24 }
 0xa5a   :  { %v5051_v49 = vmul.f32 %v5047_v35, %v5047_v35 }
 0xa5b   :  { %v5058_v59 = vsel %vm188_vm0, %v5052_v52, 0.0 }
 0xa5c   :  { %5059 = vadd.xlane.f32.xlu0 %v5058_v59  ;;  %v5055_v58 = vsel %vm188_vm0, %v5051_v49, 0.0 }
 0xa5d   :  { %5056 = vadd.xlane.f32.xlu1 %v5055_v58 }
 0xa8a   :  { %v5042_v20 = vpop.xlane.xlu0 %5041 }
 0xa8b   :  { %v5046_v1 = vmul.f32 0.03125, %v5042_v20  ;;  %v5039_v2 = vpop.xlane.xlu1 %5038 }
 0xa8c   :  { %v5045_v4 = vmul.f32 0.03125, %v5039_v2 }
 0xa8d   :  { %v5050_v17 = vsub.f32 %v5030_v22, %v5046_v1 }
 0xa8e   :  { %v5049_v10 = vsub.f32 %v5029_v53, %v5045_v4 }
 0xa8f   :  { %v5054_v31 = vmul.f32 %v5050_v17, %v5050_v17 }
 0xa90   :  { %v5053_v6 = vmul.f32 %v5049_v10, %v5049_v10 }
 0xa91   :  { %v5064_v37 = vsel %vm188_vm0, %v5054_v31, 0.0 }
 0xa92   :  { %5065 = vadd.xlane.f32.xlu0 %v5064_v37  ;;  %v5061_v3 = vsel %vm188_vm0, %v5053_v6, 0.0 }
 0xa93   :  { %5062 = vadd.xlane.f32.xlu1 %v5061_v3 }
 0xae9   :  { %v5060_v30 = vpop.xlane.xlu0 %5059 }
 0xaea   :  { %v5057_v63 = vpop.xlane.xlu1 %5056  ;;  %v5068_v32 = vmul.f32 0.03125, %v5060_v30 }
 0xaeb   :  { %v5067_v18 = vmul.f32 0.03125, %v5057_v63 }
 0xaec   :  { %v5072_v15 = vadd.f32 1e-05, %v5068_v32 }
 0xaed   :  { %v5071_v26 = vadd.f32 1e-05, %v5067_v18 }
 0xaee   :  { %5855 = vrsqrt.f32 %v5072_v15 }
 0xaef   :  { %5857 = vrsqrt.f32 %v5071_v26 }
 0xaf8   :  { %v5856_v43 = vpop.eup %5855 }
 0xaf9   :  { %v5858_v55 = vpop.eup %5857  ;;  %v5080_v41 = vmul.f32 %v5856_v43, %v5048_v24 }
 0xafa   :  { %v5079_v33 = vmul.f32 %v5858_v55, %v5047_v35 }
 0xafb   :  { %v5088_v54 = vmul.f32 %v5086_v14, %v5080_v41 }
 0xafc   :  { %v5087_v39 = vmul.f32 %v5086_v14, %v5079_v33 }
 0xafd   :  { %v5096_v34 = vadd.f32 %v5094_v11, %v5088_v54 }
 0xafe   :  { %v5095_v29 = vadd.f32 %v5094_v11, %v5087_v39 }
 0xb1f   :  { %v5066_v50 = vpop.xlane.xlu0 %5065 }
 0xb20   :  { %v5070_v48 = vmul.f32 0.03125, %v5066_v50  ;;  %v5063_v0 = vpop.xlane.xlu1 %5062 }
 0xb21   :  { %v5069_v61 = vmul.f32 0.03125, %v5063_v0 }
 0xb22   :  { %v5074_v42 = vadd.f32 1e-05, %v5070_v48 }
 0xb23   :  { %v5073_v7 = vadd.f32 1e-05, %v5069_v61 }
 0xb24   :  { %5859 = vrsqrt.f32 %v5074_v42 }
 0xb25   :  { %5861 = vrsqrt.f32 %v5073_v7 }
 0xb2e   :  { %v5860_v51 = vpop.eup %5859 }
 0xb2f   :  { %v5862_v40 = vpop.eup %5861  ;;  %v5082_v19 = vmul.f32 %v5860_v51, %v5050_v17 }
 0xb30   :  { %v5081_v36 = vmul.f32 %v5862_v40, %v5049_v10 }
 0xb31   :  { %v5090_v46 = vmul.f32 %v5086_v14, %v5082_v19 }
 0xb32   :  { %v5089_v44 = vmul.f32 %v5086_v14, %v5081_v36 }
 0xb33   :  { %v5098_v25 = vadd.f32 %v5094_v11, %v5090_v46 }
 0xb34   :  { %v5097_v23 = vadd.f32 %v5094_v11, %v5089_v44 }
 0xb35   :  { %v5115_v16 = vcombine.low %v5096_v34, %v5098_v25  ;;  %v5116_v12 = vcombine.high %v5096_v34, %v5098_v25 }
 0xb36   :  { %v5099_v13 = vcombine.low %v5095_v29, %v5097_v23  ;;  %v5100_v62 = vcombine.high %v5095_v29, %v5097_v23 }
 0xb37   :  { %v5123_v22 = vrot.slane %v5115_v16, %v5958_v21  ;;  %v5130_v53 = vrot.slane %v5116_v12, %v5958_v21 }
 0xb38   :  { %v5107_v9 = vrot.slane %v5099_v13, %v5958_v21  ;;  %v5114_v60 = vrot.slane %v5100_v62, %v5958_v21 }
 0xb3a   :  { %v5131_v47 = vcombine.low %v5107_v9, %v5123_v22  ;;  %v5132_v28 = vcombine.high %v5107_v9, %v5123_v22  ;;  %v5147_v38 = vcombine.low %v5114_v60, %v5130_v53  ;;  %v5148_v57 = vcombine.high %v5114_v60, %v5130_v53 }
 0xb3c   :  { %v5139_v5 = vrot.slane %v5131_v47, %v5961_v27  ;;  %v5146_v56 = vrot.slane %v5132_v28, %v5961_v27  ;;  %v5155_v24 = vrot.slane %v5147_v38, %v5961_v27  ;;  %v5162_v35 = vrot.slane %v5148_v57, %v5961_v27 }
 0xb3e   :  { %v5167_v52 = vcombine.low %v5139_v5, %v5146_v56  ;;  %v5353_v49 = vcombine.high %v5139_v5, %v5146_v56  ;;  %v5183_v59 = vcombine.low %v5155_v24, %v5162_v35  ;;  %v5354_v58 = vcombine.high %v5155_v24, %v5162_v35 }
 0xb40   :  { %v5174_v20 = vrot.slane %v5167_v52, %v5958_v21  ;;  %v5182_v1 = vrot.slane %v5353_v49, %v5958_v21  ;;  %v5190_v2 = vrot.slane %v5183_v59, %v5958_v21  ;;  %v5198_v4 = vrot.slane %v5354_v58, %v5958_v21 }
 0xb42   :  { %v5200_v17 = vcombine.high %v5174_v20, %v5182_v1  ;;  %v5216_v10 = vcombine.high %v5190_v2, %v5198_v4  ;;  %v5199_v31 = vcombine.low %v5174_v20, %v5182_v1  ;;  %v5215_v6 = vcombine.low %v5190_v2, %v5198_v4 }
 0xb44   :  { %v5214_v37 = vrot.slane %v5200_v17, %v5961_v27  ;;  %v5230_v3 = vrot.slane %v5216_v10, %v5961_v27  ;;  %v5207_v30 = vrot.slane %v5199_v31, %v5961_v27  ;;  %v5223_v63 = vrot.slane %v5215_v6, %v5961_v27 }
 0xb46   :  { %v5233_v32 = vcombine.low %v5214_v37, %v5230_v3  ;;  %v5232_v18 = vcombine.high %v5207_v30, %v5223_v63  ;;  %v5231_v15 = vcombine.low %v5207_v30, %v5223_v63  ;;  %v5234_v21 = vcombine.high %v5214_v37, %v5230_v3 }
 0xb48   :  { %5240 = vrot.lane.b32.xlu0 %v5233_v32, %s5892_s23  ;;  %5236 = vrot.lane.b32.xlu1 %v5232_v18, %s5890_s16 }
 0xb4c   :  { %5244 = vrot.lane.b32.xlu1 %v5234_v21, %s5891_s17 }
 0xbba   :  { %v5237_v26 = vpop.permute.xlu1 %5236  ;;  %v5241_v50 = vpop.permute.xlu0 %5240 }
 0xbbb   :  { %v5247_v48 = vsel %vm188_vm0, %v5231_v15, %v5237_v26 }
 0xbbc   :  { %v5249_v27 = vsel %vm5248_vm5, %v5247_v48, %v5241_v50 }
 0xbbe   :  { %v5245_v0 = vpop.permute.xlu1 %5244 }
 0xbbf   :  { %v5251_v61 = vsel %vm5250_vm6, %v5249_v27, %v5245_v0 }
 0xbc0   :  { %5252 = vst [vmem:[#allocation2] sm:$0xff] %v5251_v61 }
 0xbc1   :  { %5877 = shalt.err (!%p5874_p4)
}
 0xbc2   :  { %s5878_s23 = scalar_lea.hbm %s6998_s3, 128 }
 0xbc3   :  { %p5879_p5 = scmp.ne.s32.totalorder %s6998_s3, %s5878_s23  ;;  %p5882_p6 = scmp.lt.u32.totalorder %s5878_s23, %s6998_s3 }
 0xbc5   :  { %p5884_p7 = pnand %p5882_p6, %p5879_p5 }
 0xbc7   :  { %5887 = shalt.err (!%p5884_p7)
}
 0xbc8   :  { %5262 = dma.vmem_to_hbm [thread:$0]  %s5260_s29, 128, %s6998_s3, [#allocation3]  }
 0xbc9   :  { %5888 = dma.done.wait [#allocation3], 128  }
 0xbca   :  { %5889 = vsyncadd [#allocation3], 4294967168 }
 0xbcb   :  { %5266 = vsyncpa [#allocation3], 1 }

</bundles_post_ra>
